<compile_context>
chip_gen: v7x
topology: tpu7x:2x2x1
jax: 0.10.0
libtpu: 0.0.40
codegen_flags: <defaults>
</compile_context>

<pallas_src>
import math
from functools import partial

import numpy as np
import jax
import jax.numpy as jnp
from jax import lax
from jax.experimental import pallas as pl
from jax.experimental.pallas import tpu as pltpu

COMPUTE_DTYPE = jnp.bfloat16      # MXU operand dtype; accumulation stays f32
LANE = 128


def _round_up(x, m):
    return (x + m - 1) // m * m


# -----------------------------------------------------------------------------
# DCT filter bank: dct_filters_3d(k=3, groups=1, expand_dim=0, level=None,
# DC=True, l1_norm=True) -> (27, 3, 3, 3)
# -----------------------------------------------------------------------------
def dct_filters_3d_np(k=3):
    nf = k ** 3
    fb = np.zeros((nf, k, k, k), dtype=np.float32)
    m = 0
    for i in range(k):
        for j in range(k):
            for l in range(k):
                for x in range(k):
                    for y in range(k):
                        for z in range(k):
                            fb[m, x, y, z] = (
                                math.cos(math.pi * (x + 0.5) * i / k)
                                * math.cos(math.pi * (y + 0.5) * j / k)
                                * math.cos(math.pi * (z + 0.5) * l / k))
                fb[m] /= np.sum(np.abs(fb[m]))
                m += 1
    return fb


# -----------------------------------------------------------------------------
# In-kernel exact GELU (erf-based; A&S 7.1.26, |erf err| ~ 1.5e-7).  The divide
# uses the EUP approximate reciprocal so the whole GELU rides EUP/VPU slots that
# are otherwise idle next to the MXU.
# -----------------------------------------------------------------------------
def _erf_approx(x):
    a1, a2, a3, a4, a5 = 0.254829592, -0.284496736, 1.421413741, -1.453152027, 1.061405429
    p = 0.3275911
    s = jnp.sign(x)
    ax = jnp.abs(x)
    t = pl.reciprocal(1.0 + p * ax, approx=True)
    poly = ((((a5 * t + a4) * t + a3) * t + a2) * t + a1) * t
    return s * (1.0 - poly * jnp.exp(-ax * ax))


def _gelu_exact(x):
    return 0.5 * x * (1.0 + _erf_approx(x * (1.0 / math.sqrt(2.0))))


# -----------------------------------------------------------------------------
# Fused Harm3d conv kernel.  One grid step = one (batch, output-depth) plane.
#   x0/x1/x2_ref : (1, 1, H+2, W+2, Cx)   padded-input depth slices d, d+1, d+2
#   w_ref        : (27, Cx, Np)           tap-major filter (bf16), Cout padded to Np
#   b_ref        : (1, Np)                f32 bias (zero padded)
#   o_ref        : (1, 1, H, W, Np)
# -----------------------------------------------------------------------------
def _harm3d_kernel(x0_ref, x1_ref, x2_ref, w_ref, b_ref, o_ref, *, H, W, apply_gelu):
    cx = w_ref.shape[1]
    npad = w_ref.shape[2]
    acc = jnp.zeros((H * W, npad), jnp.float32)
    planes = (x0_ref, x1_ref, x2_ref)
    k = 0
    for kd in range(3):
        # do the sublane-offset shift slices in f32; back to bf16 right at the MXU
        xpl = planes[kd][0, 0].astype(jnp.float32)          # (H+2, W+2, Cx)
        for kh in range(3):
            for kw in range(3):
                xs = xpl[kh:kh + H, kw:kw + W, :].reshape(H * W, cx)
                acc += jnp.dot(xs.astype(w_ref.dtype), w_ref[k],
                               preferred_element_type=jnp.float32)
                k += 1
    acc = acc + b_ref[...]
    if apply_gelu:
        acc = _gelu_exact(acc)
    o_ref[...] = acc.reshape(1, 1, H, W, npad).astype(o_ref.dtype)


def harm3d_fused(x_cl, filt, bias, *, apply_gelu, out_dtype):
    """Fused Harm3d conv (stride=1, padding=1, groups=1) on channel-last input.

    x_cl : (B, D, H, W, Cx) with Cx >= filt.shape[1]; extra input channels are
           treated as zero-weight (used by the lane-padded hidden activation).
    filt : (Cout, Cin, 3, 3, 3) dense conv filter.
    Returns (B, D, H, W, Np), Np = round_up(Cout, 128); channels >= Cout are 0.
    """
    B, D, H, W, Cx = x_cl.shape
    Cout, Cin = filt.shape[0], filt.shape[1]
    Np = _round_up(Cout, LANE)

    # (Cout, Cin, 3,3,3) -> (27, Cx, Np): tap-major; pad in-channels to Cx and
    # out-channels to Np with zeros (so padded output channels are exactly 0).
    w = jnp.transpose(filt, (2, 3, 4, 1, 0)).reshape(27, Cin, Cout)
    w = jnp.pad(w, ((0, 0), (0, Cx - Cin), (0, Np - Cout))).astype(COMPUTE_DTYPE)
    b = jnp.pad(bias.astype(jnp.float32), (0, Np - Cout)).reshape(1, Np)

    # conv padding=1: zero-pad the spatial dims; cast MXU operand dtype once.
    xp = jnp.pad(x_cl.astype(COMPUTE_DTYPE), ((0, 0), (1, 1), (1, 1), (1, 1), (0, 0)))

    plane = (1, 1, H + 2, W + 2, Cx)
    x_specs = [pl.BlockSpec(plane, lambda bb, dd, o=o: (bb, dd + o, 0, 0, 0))
               for o in range(3)]

    cost = pl.CostEstimate(
        flops=2 * B * D * H * W * 27 * Cx * Np,
        transcendentals=(2 * B * D * H * W * Np) if apply_gelu else 0,
        bytes_accessed=int(3 * xp.size * xp.dtype.itemsize
                           + w.size * w.dtype.itemsize + 4 * b.size
                           + B * D * H * W * Np * np.dtype(out_dtype).itemsize))

    return pl.pallas_call(
        partial(_harm3d_kernel, H=H, W=W, apply_gelu=apply_gelu),
        out_shape=jax.ShapeDtypeStruct((B, D, H, W, Np), out_dtype),
        grid=(B, D),
        in_specs=x_specs + [
            pl.BlockSpec((27, Cx, Np), lambda bb, dd: (0, 0, 0)),
            pl.BlockSpec((1, Np), lambda bb, dd: (0, 0)),
        ],
        out_specs=pl.BlockSpec((1, 1, H, W, Np), lambda bb, dd: (bb, dd, 0, 0, 0)),
        compiler_params=pltpu.CompilerParams(
            dimension_semantics=("parallel", "parallel")),
        cost_estimate=cost,
    )(xp, xp, xp, w, b)


# -----------------------------------------------------------------------------
# Harm3d forward (PyTorch no-BN branch): filt = sum_f weight[o,i,f] * dct[f],
# then conv3d(stride=1, padding=1) + bias.  NCDHW in / NCDHW out.
# TODO(synk): use_bn=True branch (dct depthwise conv + BatchNorm3d + 1x1x1 conv),
#             groups>1, stride!=1 and dilation!=1 variants are not implemented.
# -----------------------------------------------------------------------------
def harm3d_forward(x_ncdhw, weight, bias, dct, *, apply_gelu=False):
    Cout = weight.shape[0]
    filt = jnp.einsum("oif,fxyz->oixyz", weight[:, :, :, 0, 0, 0], dct)
    x_cl = jnp.transpose(x_ncdhw, (0, 2, 3, 4, 1))
    y = harm3d_fused(x_cl, filt, bias, apply_gelu=apply_gelu, out_dtype=jnp.float32)
    return jnp.transpose(y[..., :Cout], (0, 4, 1, 2, 3))


# -----------------------------------------------------------------------------
# Mlp forward: fc1 (Harm3d) -> exact GELU (fused) -> drop(p=0, identity) -> fc2.
# The activation stays NDHWC and lane-padded between the two layers.
# -----------------------------------------------------------------------------
def mlp_forward(x_ncdhw, params):
    dct = params["dct"]
    filt1 = jnp.einsum("oif,fxyz->oixyz", params["w1"][:, :, :, 0, 0, 0], dct)
    filt2 = jnp.einsum("oif,fxyz->oixyz", params["w2"][:, :, :, 0, 0, 0], dct)
    Cout = filt2.shape[0]

    x_cl = jnp.transpose(x_ncdhw, (0, 2, 3, 4, 1))                  # NCDHW -> NDHWC once
    h = harm3d_fused(x_cl, filt1, params["b1"], apply_gelu=True,
                     out_dtype=COMPUTE_DTYPE)                       # (B,D,H,W,128), pad ch = 0
    y = harm3d_fused(h, filt2, params["b2"], apply_gelu=False,
                     out_dtype=jnp.float32)                         # dense K=128 contraction
    return jnp.transpose(y[..., :Cout], (0, 4, 1, 2, 3))            # NDHWC -> NCDHW once


# -----------------------------------------------------------------------------
# Deterministic init (kaiming_normal_ fan_out / relu: std = sqrt(2 / (no * nf)))
# -----------------------------------------------------------------------------
def init_mlp_params(key, in_features, hidden_features, out_features):
    nf = 27
    k1, k2 = jax.random.split(key)
    std1 = math.sqrt(2.0 / (hidden_features * nf))
    std2 = math.sqrt(2.0 / (out_features * nf))
    return {
        "dct": jnp.asarray(dct_filters_3d_np(3)),
        "w1": std1 * jax.random.normal(k1, (hidden_features, in_features, nf, 1, 1, 1), jnp.float32),
        "b1": jnp.zeros((hidden_features,), jnp.float32),
        "w2": std2 * jax.random.normal(k2, (out_features, hidden_features, nf, 1, 1, 1), jnp.float32),
        "b2": jnp.zeros((out_features,), jnp.float32),
    }


# -----------------------------------------------------------------------------
# Pure-JAX f32 references for silent correctness checks.
# -----------------------------------------------------------------------------
def _ref_harm3d(x, weight, bias, dct):
    filt = jnp.einsum("oif,fxyz->oixyz", weight[:, :, :, 0, 0, 0], dct)
    y = lax.conv_general_dilated(
        x, filt, window_strides=(1, 1, 1), padding=((1, 1), (1, 1), (1, 1)),
        dimension_numbers=("NCDHW", "OIDHW", "NCDHW"))
    return y + bias[None, :, None, None, None]


def _ref_mlp(x, params):
    h = _ref_harm3d(x, params["w1"], params["b1"], params["dct"])
    h = jax.nn.gelu(h, approximate=False)
    return _ref_harm3d(h, params["w2"], params["b2"], params["dct"])


if __name__ == "__main__":
    key = jax.random.PRNGKey(0)
    kx, kp = jax.random.split(key)

    B, Cin, D, H, W = 2, 4, 8, 8, 8        # NCDHW, like the PyTorch module's conv3d input
    hidden, Cout = 8, 4                    # out_features defaults to in_features

    x = jax.random.normal(kx, (B, Cin, D, H, W), jnp.float32)
    params = init_mlp_params(kp, Cin, hidden, Cout)

    # Single Harm3d layer (the module spec itself).
    y1 = jax.block_until_ready(
        jax.jit(harm3d_forward)(x, params["w1"], params["b1"], params["dct"]))
    y1_ref = _ref_harm3d(x, params["w1"], params["b1"], params["dct"])
    np.testing.assert_allclose(np.asarray(y1), np.asarray(y1_ref),
                               rtol=2e-2, atol=2e-2)   # bf16 MXU operands, f32 accumulate

    # Two Harm3d layers with fused exact GELU in between (Mlp usage).
    y = jax.block_until_ready(jax.jit(mlp_forward)(x, params))
    np.testing.assert_allclose(np.asarray(y), np.asarray(_ref_mlp(x, params)),
                               rtol=2e-2, atol=2e-2)

    print("KERNEL_OK")
</pallas_src>

<mosaic_0001>
module attributes {stable_mosaic.version = 11 : i64} {
  func.func @_harm3d_kernel(%arg0: i32, %arg1: i32, %arg2: memref<1x1x10x10x4xbf16, #tpu.memory_space<vmem>>, %arg3: memref<1x1x10x10x4xbf16, #tpu.memory_space<vmem>>, %arg4: memref<1x1x10x10x4xbf16, #tpu.memory_space<vmem>>, %arg5: memref<27x4x128xbf16, #tpu.memory_space<vmem>>, %arg6: memref<1x128xf32, #tpu.memory_space<vmem>>, %arg7: memref<1x1x8x8x128xf32, #tpu.memory_space<vmem>>) attributes {dimension_semantics = [#tpu.dimension_semantics<parallel>, #tpu.dimension_semantics<parallel>], iteration_bounds = array<i64: 2, 8>, scalar_prefetch = 0 : i64, scratch_operands = 0 : i64, tpu.core_type = #tpu.core_type<tc>, window_params = [{transform_indices = @transform_0, window_bounds = array<i64: 1, 1, 10, 10, 4>}, {transform_indices = @transform_1, window_bounds = array<i64: 1, 1, 10, 10, 4>}, {transform_indices = @transform_2, window_bounds = array<i64: 1, 1, 10, 10, 4>}, {pipeline_mode = #tpu.pipeline_mode<synchronous>, transform_indices = @transform_3, window_bounds = array<i64: 27, 4, 128>}, {pipeline_mode = #tpu.pipeline_mode<synchronous>, transform_indices = @transform_4, window_bounds = array<i64: 1, 128>}, {transform_indices = @transform_5, window_bounds = array<i64: 1, 1, 8, 8, 128>}]} {
    %cst = arith.constant 0.000000e+00 : f32
    %0 = vector.broadcast %cst : f32 to vector<64x128xf32>
    %c0 = arith.constant 0 : index
    %c0_0 = arith.constant 0 : index
    %c0_1 = arith.constant 0 : index
    %c0_2 = arith.constant 0 : index
    %c0_3 = arith.constant 0 : index
    %1 = vector.load %arg2[%c0, %c0_0, %c0_1, %c0_2, %c0_3] : memref<1x1x10x10x4xbf16, #tpu.memory_space<vmem>>, vector<1x1x10x10x4xbf16>
    %2 = vector.shape_cast %1 : vector<1x1x10x10x4xbf16> to vector<10x10x4xbf16>
    %3 = arith.extf %2 : vector<10x10x4xbf16> to vector<10x10x4xf32>
    %4 = vector.extract_strided_slice %3 {offsets = [0, 0, 0], sizes = [8, 8, 4], strides = [1, 1, 1]} : vector<10x10x4xf32> to vector<8x8x4xf32>
    %5 = vector.shape_cast %4 : vector<8x8x4xf32> to vector<64x4xf32>
    %6 = arith.truncf %5 : vector<64x4xf32> to vector<64x4xbf16>
    %c0_4 = arith.constant 0 : index
    %c0_5 = arith.constant 0 : index
    %c0_6 = arith.constant 0 : index
    %7 = vector.load %arg5[%c0_4, %c0_5, %c0_6] : memref<27x4x128xbf16, #tpu.memory_space<vmem>>, vector<1x4x128xbf16>
    %8 = vector.shape_cast %7 : vector<1x4x128xbf16> to vector<4x128xbf16>
    %cst_7 = arith.constant dense<0.000000e+00> : vector<64x128xf32>
    %9 = tpu.matmul %6, %8, %cst_7 {dimension_numbers = #tpu.dot_dimension_numbers<[1], [0], [0], [1], [0, 0, 1, 1], [], []>} : vector<64x4xbf16>, vector<4x128xbf16>, vector<64x128xf32> -> vector<64x128xf32>
    %10 = arith.addf %0, %9 : vector<64x128xf32>
    %11 = vector.extract_strided_slice %3 {offsets = [0, 1, 0], sizes = [8, 8, 4], strides = [1, 1, 1]} : vector<10x10x4xf32> to vector<8x8x4xf32>
    %12 = vector.shape_cast %11 : vector<8x8x4xf32> to vector<64x4xf32>
    %13 = arith.truncf %12 : vector<64x4xf32> to vector<64x4xbf16>
    %c1 = arith.constant 1 : index
    %c0_8 = arith.constant 0 : index
    %c0_9 = arith.constant 0 : index
    %14 = vector.load %arg5[%c1, %c0_8, %c0_9] : memref<27x4x128xbf16, #tpu.memory_space<vmem>>, vector<1x4x128xbf16>
    %15 = vector.shape_cast %14 : vector<1x4x128xbf16> to vector<4x128xbf16>
    %cst_10 = arith.constant dense<0.000000e+00> : vector<64x128xf32>
    %16 = tpu.matmul %13, %15, %cst_10 {dimension_numbers = #tpu.dot_dimension_numbers<[1], [0], [0], [1], [0, 0, 1, 1], [], []>} : vector<64x4xbf16>, vector<4x128xbf16>, vector<64x128xf32> -> vector<64x128xf32>
    %17 = arith.addf %10, %16 : vector<64x128xf32>
    %18 = vector.extract_strided_slice %3 {offsets = [0, 2, 0], sizes = [8, 8, 4], strides = [1, 1, 1]} : vector<10x10x4xf32> to vector<8x8x4xf32>
    %19 = vector.shape_cast %18 : vector<8x8x4xf32> to vector<64x4xf32>
    %20 = arith.truncf %19 : vector<64x4xf32> to vector<64x4xbf16>
    %c2 = arith.constant 2 : index
    %c0_11 = arith.constant 0 : index
    %c0_12 = arith.constant 0 : index
    %21 = vector.load %arg5[%c2, %c0_11, %c0_12] : memref<27x4x128xbf16, #tpu.memory_space<vmem>>, vector<1x4x128xbf16>
    %22 = vector.shape_cast %21 : vector<1x4x128xbf16> to vector<4x128xbf16>
    %cst_13 = arith.constant dense<0.000000e+00> : vector<64x128xf32>
    %23 = tpu.matmul %20, %22, %cst_13 {dimension_numbers = #tpu.dot_dimension_numbers<[1], [0], [0], [1], [0, 0, 1, 1], [], []>} : vector<64x4xbf16>, vector<4x128xbf16>, vector<64x128xf32> -> vector<64x128xf32>
    %24 = arith.addf %17, %23 : vector<64x128xf32>
    %25 = vector.extract_strided_slice %3 {offsets = [1, 0, 0], sizes = [8, 8, 4], strides = [1, 1, 1]} : vector<10x10x4xf32> to vector<8x8x4xf32>
    %26 = vector.shape_cast %25 : vector<8x8x4xf32> to vector<64x4xf32>
    %27 = arith.truncf %26 : vector<64x4xf32> to vector<64x4xbf16>
    %c3 = arith.constant 3 : index
    %c0_14 = arith.constant 0 : index
    %c0_15 = arith.constant 0 : index
    %28 = vector.load %arg5[%c3, %c0_14, %c0_15] : memref<27x4x128xbf16, #tpu.memory_space<vmem>>, vector<1x4x128xbf16>
    %29 = vector.shape_cast %28 : vector<1x4x128xbf16> to vector<4x128xbf16>
    %cst_16 = arith.constant dense<0.000000e+00> : vector<64x128xf32>
    %30 = tpu.matmul %27, %29, %cst_16 {dimension_numbers = #tpu.dot_dimension_numbers<[1], [0], [0], [1], [0, 0, 1, 1], [], []>} : vector<64x4xbf16>, vector<4x128xbf16>, vector<64x128xf32> -> vector<64x128xf32>
    %31 = arith.addf %24, %30 : vector<64x128xf32>
    %32 = vector.extract_strided_slice %3 {offsets = [1, 1, 0], sizes = [8, 8, 4], strides = [1, 1, 1]} : vector<10x10x4xf32> to vector<8x8x4xf32>
    %33 = vector.shape_cast %32 : vector<8x8x4xf32> to vector<64x4xf32>
    %34 = arith.truncf %33 : vector<64x4xf32> to vector<64x4xbf16>
    %c4 = arith.constant 4 : index
    %c0_17 = arith.constant 0 : index
    %c0_18 = arith.constant 0 : index
    %35 = vector.load %arg5[%c4, %c0_17, %c0_18] : memref<27x4x128xbf16, #tpu.memory_space<vmem>>, vector<1x4x128xbf16>
    %36 = vector.shape_cast %35 : vector<1x4x128xbf16> to vector<4x128xbf16>
    %cst_19 = arith.constant dense<0.000000e+00> : vector<64x128xf32>
    %37 = tpu.matmul %34, %36, %cst_19 {dimension_numbers = #tpu.dot_dimension_numbers<[1], [0], [0], [1], [0, 0, 1, 1], [], []>} : vector<64x4xbf16>, vector<4x128xbf16>, vector<64x128xf32> -> vector<64x128xf32>
    %38 = arith.addf %31, %37 : vector<64x128xf32>
    %39 = vector.extract_strided_slice %3 {offsets = [1, 2, 0], sizes = [8, 8, 4], strides = [1, 1, 1]} : vector<10x10x4xf32> to vector<8x8x4xf32>
    %40 = vector.shape_cast %39 : vector<8x8x4xf32> to vector<64x4xf32>
    %41 = arith.truncf %40 : vector<64x4xf32> to vector<64x4xbf16>
    %c5 = arith.constant 5 : index
    %c0_20 = arith.constant 0 : index
    %c0_21 = arith.constant 0 : index
    %42 = vector.load %arg5[%c5, %c0_20, %c0_21] : memref<27x4x128xbf16, #tpu.memory_space<vmem>>, vector<1x4x128xbf16>
    %43 = vector.shape_cast %42 : vector<1x4x128xbf16> to vector<4x128xbf16>
    %cst_22 = arith.constant dense<0.000000e+00> : vector<64x128xf32>
    %44 = tpu.matmul %41, %43, %cst_22 {dimension_numbers = #tpu.dot_dimension_numbers<[1], [0], [0], [1], [0, 0, 1, 1], [], []>} : vector<64x4xbf16>, vector<4x128xbf16>, vector<64x128xf32> -> vector<64x128xf32>
    %45 = arith.addf %38, %44 : vector<64x128xf32>
    %46 = vector.extract_strided_slice %3 {offsets = [2, 0, 0], sizes = [8, 8, 4], strides = [1, 1, 1]} : vector<10x10x4xf32> to vector<8x8x4xf32>
    %47 = vector.shape_cast %46 : vector<8x8x4xf32> to vector<64x4xf32>
    %48 = arith.truncf %47 : vector<64x4xf32> to vector<64x4xbf16>
    %c6 = arith.constant 6 : index
    %c0_23 = arith.constant 0 : index
    %c0_24 = arith.constant 0 : index
    %49 = vector.load %arg5[%c6, %c0_23, %c0_24] : memref<27x4x128xbf16, #tpu.memory_space<vmem>>, vector<1x4x128xbf16>
    %50 = vector.shape_cast %49 : vector<1x4x128xbf16> to vector<4x128xbf16>
    %cst_25 = arith.constant dense<0.000000e+00> : vector<64x128xf32>
    %51 = tpu.matmul %48, %50, %cst_25 {dimension_numbers = #tpu.dot_dimension_numbers<[1], [0], [0], [1], [0, 0, 1, 1], [], []>} : vector<64x4xbf16>, vector<4x128xbf16>, vector<64x128xf32> -> vector<64x128xf32>
    %52 = arith.addf %45, %51 : vector<64x128xf32>
    %53 = vector.extract_strided_slice %3 {offsets = [2, 1, 0], sizes = [8, 8, 4], strides = [1, 1, 1]} : vector<10x10x4xf32> to vector<8x8x4xf32>
    %54 = vector.shape_cast %53 : vector<8x8x4xf32> to vector<64x4xf32>
    %55 = arith.truncf %54 : vector<64x4xf32> to vector<64x4xbf16>
    %c7 = arith.constant 7 : index
    %c0_26 = arith.constant 0 : index
    %c0_27 = arith.constant 0 : index
    %56 = vector.load %arg5[%c7, %c0_26, %c0_27] : memref<27x4x128xbf16, #tpu.memory_space<vmem>>, vector<1x4x128xbf16>
    %57 = vector.shape_cast %56 : vector<1x4x128xbf16> to vector<4x128xbf16>
    %cst_28 = arith.constant dense<0.000000e+00> : vector<64x128xf32>
    %58 = tpu.matmul %55, %57, %cst_28 {dimension_numbers = #tpu.dot_dimension_numbers<[1], [0], [0], [1], [0, 0, 1, 1], [], []>} : vector<64x4xbf16>, vector<4x128xbf16>, vector<64x128xf32> -> vector<64x128xf32>
    %59 = arith.addf %52, %58 : vector<64x128xf32>
    %60 = vector.extract_strided_slice %3 {offsets = [2, 2, 0], sizes = [8, 8, 4], strides = [1, 1, 1]} : vector<10x10x4xf32> to vector<8x8x4xf32>
    %61 = vector.shape_cast %60 : vector<8x8x4xf32> to vector<64x4xf32>
    %62 = arith.truncf %61 : vector<64x4xf32> to vector<64x4xbf16>
    %c8 = arith.constant 8 : index
    %c0_29 = arith.constant 0 : index
    %c0_30 = arith.constant 0 : index
    %63 = vector.load %arg5[%c8, %c0_29, %c0_30] : memref<27x4x128xbf16, #tpu.memory_space<vmem>>, vector<1x4x128xbf16>
    %64 = vector.shape_cast %63 : vector<1x4x128xbf16> to vector<4x128xbf16>
    %cst_31 = arith.constant dense<0.000000e+00> : vector<64x128xf32>
    %65 = tpu.matmul %62, %64, %cst_31 {dimension_numbers = #tpu.dot_dimension_numbers<[1], [0], [0], [1], [0, 0, 1, 1], [], []>} : vector<64x4xbf16>, vector<4x128xbf16>, vector<64x128xf32> -> vector<64x128xf32>
    %66 = arith.addf %59, %65 : vector<64x128xf32>
    %c0_32 = arith.constant 0 : index
    %c0_33 = arith.constant 0 : index
    %c0_34 = arith.constant 0 : index
    %c0_35 = arith.constant 0 : index
    %c0_36 = arith.constant 0 : index
    %67 = vector.load %arg3[%c0_32, %c0_33, %c0_34, %c0_35, %c0_36] : memref<1x1x10x10x4xbf16, #tpu.memory_space<vmem>>, vector<1x1x10x10x4xbf16>
    %68 = vector.shape_cast %67 : vector<1x1x10x10x4xbf16> to vector<10x10x4xbf16>
    %69 = arith.extf %68 : vector<10x10x4xbf16> to vector<10x10x4xf32>
    %70 = vector.extract_strided_slice %69 {offsets = [0, 0, 0], sizes = [8, 8, 4], strides = [1, 1, 1]} : vector<10x10x4xf32> to vector<8x8x4xf32>
    %71 = vector.shape_cast %70 : vector<8x8x4xf32> to vector<64x4xf32>
    %72 = arith.truncf %71 : vector<64x4xf32> to vector<64x4xbf16>
    %c9 = arith.constant 9 : index
    %c0_37 = arith.constant 0 : index
    %c0_38 = arith.constant 0 : index
    %73 = vector.load %arg5[%c9, %c0_37, %c0_38] : memref<27x4x128xbf16, #tpu.memory_space<vmem>>, vector<1x4x128xbf16>
    %74 = vector.shape_cast %73 : vector<1x4x128xbf16> to vector<4x128xbf16>
    %cst_39 = arith.constant dense<0.000000e+00> : vector<64x128xf32>
    %75 = tpu.matmul %72, %74, %cst_39 {dimension_numbers = #tpu.dot_dimension_numbers<[1], [0], [0], [1], [0, 0, 1, 1], [], []>} : vector<64x4xbf16>, vector<4x128xbf16>, vector<64x128xf32> -> vector<64x128xf32>
    %76 = arith.addf %66, %75 : vector<64x128xf32>
    %77 = vector.extract_strided_slice %69 {offsets = [0, 1, 0], sizes = [8, 8, 4], strides = [1, 1, 1]} : vector<10x10x4xf32> to vector<8x8x4xf32>
    %78 = vector.shape_cast %77 : vector<8x8x4xf32> to vector<64x4xf32>
    %79 = arith.truncf %78 : vector<64x4xf32> to vector<64x4xbf16>
    %c10 = arith.constant 10 : index
    %c0_40 = arith.constant 0 : index
    %c0_41 = arith.constant 0 : index
    %80 = vector.load %arg5[%c10, %c0_40, %c0_41] : memref<27x4x128xbf16, #tpu.memory_space<vmem>>, vector<1x4x128xbf16>
    %81 = vector.shape_cast %80 : vector<1x4x128xbf16> to vector<4x128xbf16>
    %cst_42 = arith.constant dense<0.000000e+00> : vector<64x128xf32>
    %82 = tpu.matmul %79, %81, %cst_42 {dimension_numbers = #tpu.dot_dimension_numbers<[1], [0], [0], [1], [0, 0, 1, 1], [], []>} : vector<64x4xbf16>, vector<4x128xbf16>, vector<64x128xf32> -> vector<64x128xf32>
    %83 = arith.addf %76, %82 : vector<64x128xf32>
    %84 = vector.extract_strided_slice %69 {offsets = [0, 2, 0], sizes = [8, 8, 4], strides = [1, 1, 1]} : vector<10x10x4xf32> to vector<8x8x4xf32>
    %85 = vector.shape_cast %84 : vector<8x8x4xf32> to vector<64x4xf32>
    %86 = arith.truncf %85 : vector<64x4xf32> to vector<64x4xbf16>
    %c11 = arith.constant 11 : index
    %c0_43 = arith.constant 0 : index
    %c0_44 = arith.constant 0 : index
    %87 = vector.load %arg5[%c11, %c0_43, %c0_44] : memref<27x4x128xbf16, #tpu.memory_space<vmem>>, vector<1x4x128xbf16>
    %88 = vector.shape_cast %87 : vector<1x4x128xbf16> to vector<4x128xbf16>
    %cst_45 = arith.constant dense<0.000000e+00> : vector<64x128xf32>
    %89 = tpu.matmul %86, %88, %cst_45 {dimension_numbers = #tpu.dot_dimension_numbers<[1], [0], [0], [1], [0, 0, 1, 1], [], []>} : vector<64x4xbf16>, vector<4x128xbf16>, vector<64x128xf32> -> vector<64x128xf32>
    %90 = arith.addf %83, %89 : vector<64x128xf32>
    %91 = vector.extract_strided_slice %69 {offsets = [1, 0, 0], sizes = [8, 8, 4], strides = [1, 1, 1]} : vector<10x10x4xf32> to vector<8x8x4xf32>
    %92 = vector.shape_cast %91 : vector<8x8x4xf32> to vector<64x4xf32>
    %93 = arith.truncf %92 : vector<64x4xf32> to vector<64x4xbf16>
    %c12 = arith.constant 12 : index
    %c0_46 = arith.constant 0 : index
    %c0_47 = arith.constant 0 : index
    %94 = vector.load %arg5[%c12, %c0_46, %c0_47] : memref<27x4x128xbf16, #tpu.memory_space<vmem>>, vector<1x4x128xbf16>
    %95 = vector.shape_cast %94 : vector<1x4x128xbf16> to vector<4x128xbf16>
    %cst_48 = arith.constant dense<0.000000e+00> : vector<64x128xf32>
    %96 = tpu.matmul %93, %95, %cst_48 {dimension_numbers = #tpu.dot_dimension_numbers<[1], [0], [0], [1], [0, 0, 1, 1], [], []>} : vector<64x4xbf16>, vector<4x128xbf16>, vector<64x128xf32> -> vector<64x128xf32>
    %97 = arith.addf %90, %96 : vector<64x128xf32>
    %98 = vector.extract_strided_slice %69 {offsets = [1, 1, 0], sizes = [8, 8, 4], strides = [1, 1, 1]} : vector<10x10x4xf32> to vector<8x8x4xf32>
    %99 = vector.shape_cast %98 : vector<8x8x4xf32> to vector<64x4xf32>
    %100 = arith.truncf %99 : vector<64x4xf32> to vector<64x4xbf16>
    %c13 = arith.constant 13 : index
    %c0_49 = arith.constant 0 : index
    %c0_50 = arith.constant 0 : index
    %101 = vector.load %arg5[%c13, %c0_49, %c0_50] : memref<27x4x128xbf16, #tpu.memory_space<vmem>>, vector<1x4x128xbf16>
    %102 = vector.shape_cast %101 : vector<1x4x128xbf16> to vector<4x128xbf16>
    %cst_51 = arith.constant dense<0.000000e+00> : vector<64x128xf32>
    %103 = tpu.matmul %100, %102, %cst_51 {dimension_numbers = #tpu.dot_dimension_numbers<[1], [0], [0], [1], [0, 0, 1, 1], [], []>} : vector<64x4xbf16>, vector<4x128xbf16>, vector<64x128xf32> -> vector<64x128xf32>
    %104 = arith.addf %97, %103 : vector<64x128xf32>
    %105 = vector.extract_strided_slice %69 {offsets = [1, 2, 0], sizes = [8, 8, 4], strides = [1, 1, 1]} : vector<10x10x4xf32> to vector<8x8x4xf32>
    %106 = vector.shape_cast %105 : vector<8x8x4xf32> to vector<64x4xf32>
    %107 = arith.truncf %106 : vector<64x4xf32> to vector<64x4xbf16>
    %c14 = arith.constant 14 : index
    %c0_52 = arith.constant 0 : index
    %c0_53 = arith.constant 0 : index
    %108 = vector.load %arg5[%c14, %c0_52, %c0_53] : memref<27x4x128xbf16, #tpu.memory_space<vmem>>, vector<1x4x128xbf16>
    %109 = vector.shape_cast %108 : vector<1x4x128xbf16> to vector<4x128xbf16>
    %cst_54 = arith.constant dense<0.000000e+00> : vector<64x128xf32>
    %110 = tpu.matmul %107, %109, %cst_54 {dimension_numbers = #tpu.dot_dimension_numbers<[1], [0], [0], [1], [0, 0, 1, 1], [], []>} : vector<64x4xbf16>, vector<4x128xbf16>, vector<64x128xf32> -> vector<64x128xf32>
    %111 = arith.addf %104, %110 : vector<64x128xf32>
    %112 = vector.extract_strided_slice %69 {offsets = [2, 0, 0], sizes = [8, 8, 4], strides = [1, 1, 1]} : vector<10x10x4xf32> to vector<8x8x4xf32>
    %113 = vector.shape_cast %112 : vector<8x8x4xf32> to vector<64x4xf32>
    %114 = arith.truncf %113 : vector<64x4xf32> to vector<64x4xbf16>
    %c15 = arith.constant 15 : index
    %c0_55 = arith.constant 0 : index
    %c0_56 = arith.constant 0 : index
    %115 = vector.load %arg5[%c15, %c0_55, %c0_56] : memref<27x4x128xbf16, #tpu.memory_space<vmem>>, vector<1x4x128xbf16>
    %116 = vector.shape_cast %115 : vector<1x4x128xbf16> to vector<4x128xbf16>
    %cst_57 = arith.constant dense<0.000000e+00> : vector<64x128xf32>
    %117 = tpu.matmul %114, %116, %cst_57 {dimension_numbers = #tpu.dot_dimension_numbers<[1], [0], [0], [1], [0, 0, 1, 1], [], []>} : vector<64x4xbf16>, vector<4x128xbf16>, vector<64x128xf32> -> vector<64x128xf32>
    %118 = arith.addf %111, %117 : vector<64x128xf32>
    %119 = vector.extract_strided_slice %69 {offsets = [2, 1, 0], sizes = [8, 8, 4], strides = [1, 1, 1]} : vector<10x10x4xf32> to vector<8x8x4xf32>
    %120 = vector.shape_cast %119 : vector<8x8x4xf32> to vector<64x4xf32>
    %121 = arith.truncf %120 : vector<64x4xf32> to vector<64x4xbf16>
    %c16 = arith.constant 16 : index
    %c0_58 = arith.constant 0 : index
    %c0_59 = arith.constant 0 : index
    %122 = vector.load %arg5[%c16, %c0_58, %c0_59] : memref<27x4x128xbf16, #tpu.memory_space<vmem>>, vector<1x4x128xbf16>
    %123 = vector.shape_cast %122 : vector<1x4x128xbf16> to vector<4x128xbf16>
    %cst_60 = arith.constant dense<0.000000e+00> : vector<64x128xf32>
    %124 = tpu.matmul %121, %123, %cst_60 {dimension_numbers = #tpu.dot_dimension_numbers<[1], [0], [0], [1], [0, 0, 1, 1], [], []>} : vector<64x4xbf16>, vector<4x128xbf16>, vector<64x128xf32> -> vector<64x128xf32>
    %125 = arith.addf %118, %124 : vector<64x128xf32>
    %126 = vector.extract_strided_slice %69 {offsets = [2, 2, 0], sizes = [8, 8, 4], strides = [1, 1, 1]} : vector<10x10x4xf32> to vector<8x8x4xf32>
    %127 = vector.shape_cast %126 : vector<8x8x4xf32> to vector<64x4xf32>
    %128 = arith.truncf %127 : vector<64x4xf32> to vector<64x4xbf16>
    %c17 = arith.constant 17 : index
    %c0_61 = arith.constant 0 : index
    %c0_62 = arith.constant 0 : index
    %129 = vector.load %arg5[%c17, %c0_61, %c0_62] : memref<27x4x128xbf16, #tpu.memory_space<vmem>>, vector<1x4x128xbf16>
    %130 = vector.shape_cast %129 : vector<1x4x128xbf16> to vector<4x128xbf16>
    %cst_63 = arith.constant dense<0.000000e+00> : vector<64x128xf32>
    %131 = tpu.matmul %128, %130, %cst_63 {dimension_numbers = #tpu.dot_dimension_numbers<[1], [0], [0], [1], [0, 0, 1, 1], [], []>} : vector<64x4xbf16>, vector<4x128xbf16>, vector<64x128xf32> -> vector<64x128xf32>
    %132 = arith.addf %125, %131 : vector<64x128xf32>
    %c0_64 = arith.constant 0 : index
    %c0_65 = arith.constant 0 : index
    %c0_66 = arith.constant 0 : index
    %c0_67 = arith.constant 0 : index
    %c0_68 = arith.constant 0 : index
    %133 = vector.load %arg4[%c0_64, %c0_65, %c0_66, %c0_67, %c0_68] : memref<1x1x10x10x4xbf16, #tpu.memory_space<vmem>>, vector<1x1x10x10x4xbf16>
    %134 = vector.shape_cast %133 : vector<1x1x10x10x4xbf16> to vector<10x10x4xbf16>
    %135 = arith.extf %134 : vector<10x10x4xbf16> to vector<10x10x4xf32>
    %136 = vector.extract_strided_slice %135 {offsets = [0, 0, 0], sizes = [8, 8, 4], strides = [1, 1, 1]} : vector<10x10x4xf32> to vector<8x8x4xf32>
    %137 = vector.shape_cast %136 : vector<8x8x4xf32> to vector<64x4xf32>
    %138 = arith.truncf %137 : vector<64x4xf32> to vector<64x4xbf16>
    %c18 = arith.constant 18 : index
    %c0_69 = arith.constant 0 : index
    %c0_70 = arith.constant 0 : index
    %139 = vector.load %arg5[%c18, %c0_69, %c0_70] : memref<27x4x128xbf16, #tpu.memory_space<vmem>>, vector<1x4x128xbf16>
    %140 = vector.shape_cast %139 : vector<1x4x128xbf16> to vector<4x128xbf16>
    %cst_71 = arith.constant dense<0.000000e+00> : vector<64x128xf32>
    %141 = tpu.matmul %138, %140, %cst_71 {dimension_numbers = #tpu.dot_dimension_numbers<[1], [0], [0], [1], [0, 0, 1, 1], [], []>} : vector<64x4xbf16>, vector<4x128xbf16>, vector<64x128xf32> -> vector<64x128xf32>
    %142 = arith.addf %132, %141 : vector<64x128xf32>
    %143 = vector.extract_strided_slice %135 {offsets = [0, 1, 0], sizes = [8, 8, 4], strides = [1, 1, 1]} : vector<10x10x4xf32> to vector<8x8x4xf32>
    %144 = vector.shape_cast %143 : vector<8x8x4xf32> to vector<64x4xf32>
    %145 = arith.truncf %144 : vector<64x4xf32> to vector<64x4xbf16>
    %c19 = arith.constant 19 : index
    %c0_72 = arith.constant 0 : index
    %c0_73 = arith.constant 0 : index
    %146 = vector.load %arg5[%c19, %c0_72, %c0_73] : memref<27x4x128xbf16, #tpu.memory_space<vmem>>, vector<1x4x128xbf16>
    %147 = vector.shape_cast %146 : vector<1x4x128xbf16> to vector<4x128xbf16>
    %cst_74 = arith.constant dense<0.000000e+00> : vector<64x128xf32>
    %148 = tpu.matmul %145, %147, %cst_74 {dimension_numbers = #tpu.dot_dimension_numbers<[1], [0], [0], [1], [0, 0, 1, 1], [], []>} : vector<64x4xbf16>, vector<4x128xbf16>, vector<64x128xf32> -> vector<64x128xf32>
    %149 = arith.addf %142, %148 : vector<64x128xf32>
    %150 = vector.extract_strided_slice %135 {offsets = [0, 2, 0], sizes = [8, 8, 4], strides = [1, 1, 1]} : vector<10x10x4xf32> to vector<8x8x4xf32>
    %151 = vector.shape_cast %150 : vector<8x8x4xf32> to vector<64x4xf32>
    %152 = arith.truncf %151 : vector<64x4xf32> to vector<64x4xbf16>
    %c20 = arith.constant 20 : index
    %c0_75 = arith.constant 0 : index
    %c0_76 = arith.constant 0 : index
    %153 = vector.load %arg5[%c20, %c0_75, %c0_76] : memref<27x4x128xbf16, #tpu.memory_space<vmem>>, vector<1x4x128xbf16>
    %154 = vector.shape_cast %153 : vector<1x4x128xbf16> to vector<4x128xbf16>
    %cst_77 = arith.constant dense<0.000000e+00> : vector<64x128xf32>
    %155 = tpu.matmul %152, %154, %cst_77 {dimension_numbers = #tpu.dot_dimension_numbers<[1], [0], [0], [1], [0, 0, 1, 1], [], []>} : vector<64x4xbf16>, vector<4x128xbf16>, vector<64x128xf32> -> vector<64x128xf32>
    %156 = arith.addf %149, %155 : vector<64x128xf32>
    %157 = vector.extract_strided_slice %135 {offsets = [1, 0, 0], sizes = [8, 8, 4], strides = [1, 1, 1]} : vector<10x10x4xf32> to vector<8x8x4xf32>
    %158 = vector.shape_cast %157 : vector<8x8x4xf32> to vector<64x4xf32>
    %159 = arith.truncf %158 : vector<64x4xf32> to vector<64x4xbf16>
    %c21 = arith.constant 21 : index
    %c0_78 = arith.constant 0 : index
    %c0_79 = arith.constant 0 : index
    %160 = vector.load %arg5[%c21, %c0_78, %c0_79] : memref<27x4x128xbf16, #tpu.memory_space<vmem>>, vector<1x4x128xbf16>
    %161 = vector.shape_cast %160 : vector<1x4x128xbf16> to vector<4x128xbf16>
    %cst_80 = arith.constant dense<0.000000e+00> : vector<64x128xf32>
    %162 = tpu.matmul %159, %161, %cst_80 {dimension_numbers = #tpu.dot_dimension_numbers<[1], [0], [0], [1], [0, 0, 1, 1], [], []>} : vector<64x4xbf16>, vector<4x128xbf16>, vector<64x128xf32> -> vector<64x128xf32>
    %163 = arith.addf %156, %162 : vector<64x128xf32>
    %164 = vector.extract_strided_slice %135 {offsets = [1, 1, 0], sizes = [8, 8, 4], strides = [1, 1, 1]} : vector<10x10x4xf32> to vector<8x8x4xf32>
    %165 = vector.shape_cast %164 : vector<8x8x4xf32> to vector<64x4xf32>
    %166 = arith.truncf %165 : vector<64x4xf32> to vector<64x4xbf16>
    %c22 = arith.constant 22 : index
    %c0_81 = arith.constant 0 : index
    %c0_82 = arith.constant 0 : index
    %167 = vector.load %arg5[%c22, %c0_81, %c0_82] : memref<27x4x128xbf16, #tpu.memory_space<vmem>>, vector<1x4x128xbf16>
    %168 = vector.shape_cast %167 : vector<1x4x128xbf16> to vector<4x128xbf16>
    %cst_83 = arith.constant dense<0.000000e+00> : vector<64x128xf32>
    %169 = tpu.matmul %166, %168, %cst_83 {dimension_numbers = #tpu.dot_dimension_numbers<[1], [0], [0], [1], [0, 0, 1, 1], [], []>} : vector<64x4xbf16>, vector<4x128xbf16>, vector<64x128xf32> -> vector<64x128xf32>
    %170 = arith.addf %163, %169 : vector<64x128xf32>
    %171 = vector.extract_strided_slice %135 {offsets = [1, 2, 0], sizes = [8, 8, 4], strides = [1, 1, 1]} : vector<10x10x4xf32> to vector<8x8x4xf32>
    %172 = vector.shape_cast %171 : vector<8x8x4xf32> to vector<64x4xf32>
    %173 = arith.truncf %172 : vector<64x4xf32> to vector<64x4xbf16>
    %c23 = arith.constant 23 : index
    %c0_84 = arith.constant 0 : index
    %c0_85 = arith.constant 0 : index
    %174 = vector.load %arg5[%c23, %c0_84, %c0_85] : memref<27x4x128xbf16, #tpu.memory_space<vmem>>, vector<1x4x128xbf16>
    %175 = vector.shape_cast %174 : vector<1x4x128xbf16> to vector<4x128xbf16>
    %cst_86 = arith.constant dense<0.000000e+00> : vector<64x128xf32>
    %176 = tpu.matmul %173, %175, %cst_86 {dimension_numbers = #tpu.dot_dimension_numbers<[1], [0], [0], [1], [0, 0, 1, 1], [], []>} : vector<64x4xbf16>, vector<4x128xbf16>, vector<64x128xf32> -> vector<64x128xf32>
    %177 = arith.addf %170, %176 : vector<64x128xf32>
    %178 = vector.extract_strided_slice %135 {offsets = [2, 0, 0], sizes = [8, 8, 4], strides = [1, 1, 1]} : vector<10x10x4xf32> to vector<8x8x4xf32>
    %179 = vector.shape_cast %178 : vector<8x8x4xf32> to vector<64x4xf32>
    %180 = arith.truncf %179 : vector<64x4xf32> to vector<64x4xbf16>
    %c24 = arith.constant 24 : index
    %c0_87 = arith.constant 0 : index
    %c0_88 = arith.constant 0 : index
    %181 = vector.load %arg5[%c24, %c0_87, %c0_88] : memref<27x4x128xbf16, #tpu.memory_space<vmem>>, vector<1x4x128xbf16>
    %182 = vector.shape_cast %181 : vector<1x4x128xbf16> to vector<4x128xbf16>
    %cst_89 = arith.constant dense<0.000000e+00> : vector<64x128xf32>
    %183 = tpu.matmul %180, %182, %cst_89 {dimension_numbers = #tpu.dot_dimension_numbers<[1], [0], [0], [1], [0, 0, 1, 1], [], []>} : vector<64x4xbf16>, vector<4x128xbf16>, vector<64x128xf32> -> vector<64x128xf32>
    %184 = arith.addf %177, %183 : vector<64x128xf32>
    %185 = vector.extract_strided_slice %135 {offsets = [2, 1, 0], sizes = [8, 8, 4], strides = [1, 1, 1]} : vector<10x10x4xf32> to vector<8x8x4xf32>
    %186 = vector.shape_cast %185 : vector<8x8x4xf32> to vector<64x4xf32>
    %187 = arith.truncf %186 : vector<64x4xf32> to vector<64x4xbf16>
    %c25 = arith.constant 25 : index
    %c0_90 = arith.constant 0 : index
    %c0_91 = arith.constant 0 : index
    %188 = vector.load %arg5[%c25, %c0_90, %c0_91] : memref<27x4x128xbf16, #tpu.memory_space<vmem>>, vector<1x4x128xbf16>
    %189 = vector.shape_cast %188 : vector<1x4x128xbf16> to vector<4x128xbf16>
    %cst_92 = arith.constant dense<0.000000e+00> : vector<64x128xf32>
    %190 = tpu.matmul %187, %189, %cst_92 {dimension_numbers = #tpu.dot_dimension_numbers<[1], [0], [0], [1], [0, 0, 1, 1], [], []>} : vector<64x4xbf16>, vector<4x128xbf16>, vector<64x128xf32> -> vector<64x128xf32>
    %191 = arith.addf %184, %190 : vector<64x128xf32>
    %192 = vector.extract_strided_slice %135 {offsets = [2, 2, 0], sizes = [8, 8, 4], strides = [1, 1, 1]} : vector<10x10x4xf32> to vector<8x8x4xf32>
    %193 = vector.shape_cast %192 : vector<8x8x4xf32> to vector<64x4xf32>
    %194 = arith.truncf %193 : vector<64x4xf32> to vector<64x4xbf16>
    %c26 = arith.constant 26 : index
    %c0_93 = arith.constant 0 : index
    %c0_94 = arith.constant 0 : index
    %195 = vector.load %arg5[%c26, %c0_93, %c0_94] : memref<27x4x128xbf16, #tpu.memory_space<vmem>>, vector<1x4x128xbf16>
    %196 = vector.shape_cast %195 : vector<1x4x128xbf16> to vector<4x128xbf16>
    %cst_95 = arith.constant dense<0.000000e+00> : vector<64x128xf32>
    %197 = tpu.matmul %194, %196, %cst_95 {dimension_numbers = #tpu.dot_dimension_numbers<[1], [0], [0], [1], [0, 0, 1, 1], [], []>} : vector<64x4xbf16>, vector<4x128xbf16>, vector<64x128xf32> -> vector<64x128xf32>
    %198 = arith.addf %191, %197 : vector<64x128xf32>
    %c0_96 = arith.constant 0 : index
    %c0_97 = arith.constant 0 : index
    %199 = vector.load %arg6[%c0_96, %c0_97] : memref<1x128xf32, #tpu.memory_space<vmem>>, vector<1x128xf32>
    %200 = vector.broadcast %199 : vector<1x128xf32> to vector<64x128xf32>
    %201 = arith.addf %198, %200 : vector<64x128xf32>
    %202 = vector.shape_cast %201 : vector<64x128xf32> to vector<1x1x8x8x128xf32>
    %c0_98 = arith.constant 0 : index
    %c0_99 = arith.constant 0 : index
    %c0_100 = arith.constant 0 : index
    %c0_101 = arith.constant 0 : index
    %c0_102 = arith.constant 0 : index
    %203 = vector.load %arg7[%c0_98, %c0_99, %c0_100, %c0_101, %c0_102] : memref<1x1x8x8x128xf32, #tpu.memory_space<vmem>>, vector<1x1x8x8x128xf32>
    tpu.vector_store %arg7[%c0_98, %c0_99, %c0_100, %c0_101, %c0_102], %202 {strides = array<i32>} : memref<1x1x8x8x128xf32, #tpu.memory_space<vmem>>, vector<1x1x8x8x128xf32>,
    return
  }
  func.func @transform_0(%arg0: i32, %arg1: i32) -> (i32, i32, i32, i32, i32) {
    %c0_i32 = arith.constant 0 : i32
    %0 = arith.addi %arg1, %c0_i32 : i32
    %c0_i32_0 = arith.constant 0 : i32
    %c0_i32_1 = arith.constant 0 : i32
    %c0_i32_2 = arith.constant 0 : i32
    %c0_i32_3 = arith.constant 0 : i32
    return %arg0, %0, %c0_i32_0, %c0_i32_1, %c0_i32_2 : i32, i32, i32, i32, i32
  }
  func.func @transform_1(%arg0: i32, %arg1: i32) -> (i32, i32, i32, i32, i32) {
    %c1_i32 = arith.constant 1 : i32
    %0 = arith.addi %arg1, %c1_i32 : i32
    %c0_i32 = arith.constant 0 : i32
    %c0_i32_0 = arith.constant 0 : i32
    %c0_i32_1 = arith.constant 0 : i32
    %c0_i32_2 = arith.constant 0 : i32
    return %arg0, %0, %c0_i32, %c0_i32_0, %c0_i32_1 : i32, i32, i32, i32, i32
  }
  func.func @transform_2(%arg0: i32, %arg1: i32) -> (i32, i32, i32, i32, i32) {
    %c2_i32 = arith.constant 2 : i32
    %0 = arith.addi %arg1, %c2_i32 : i32
    %c0_i32 = arith.constant 0 : i32
    %c0_i32_0 = arith.constant 0 : i32
    %c0_i32_1 = arith.constant 0 : i32
    %c0_i32_2 = arith.constant 0 : i32
    return %arg0, %0, %c0_i32, %c0_i32_0, %c0_i32_1 : i32, i32, i32, i32, i32
  }
  func.func @transform_3(%arg0: i32, %arg1: i32) -> (i32, i32, i32) {
    %c0_i32 = arith.constant 0 : i32
    %c0_i32_0 = arith.constant 0 : i32
    %c0_i32_1 = arith.constant 0 : i32
    %c0_i32_2 = arith.constant 0 : i32
    return %c0_i32, %c0_i32_0, %c0_i32_1 : i32, i32, i32
  }
  func.func @transform_4(%arg0: i32, %arg1: i32) -> (i32, i32) {
    %c0_i32 = arith.constant 0 : i32
    %c0_i32_0 = arith.constant 0 : i32
    %c0_i32_1 = arith.constant 0 : i32
    return %c0_i32, %c0_i32_0 : i32, i32
  }
  func.func @transform_5(%arg0: i32, %arg1: i32) -> (i32, i32, i32, i32, i32) {
    %c0_i32 = arith.constant 0 : i32
    %c0_i32_0 = arith.constant 0 : i32
    %c0_i32_1 = arith.constant 0 : i32
    %c0_i32_2 = arith.constant 0 : i32
    return %arg0, %arg1, %c0_i32, %c0_i32_0, %c0_i32_1 : i32, i32, i32, i32, i32
  }
}

</mosaic_0001>

<bundles_post_ra>
// kernel: harm3d_forward.1
= control target key start
LH: loop header
LB: loop body
LE: loop exit
PB: predicated region body
PF: predicated region fallthrough
CT: control target
= control target key end

     0   :  { %s4303_s18 = smov 0   ;;  %s4305_s19 = smov 0   ;;  %s5442_s0 = inlined_call_operand.vmem [shape: bf16[2,10,10,10,4], index: 0, kind: input, shape index: {}, may-alias: {0,1,2}]   ;;  %s5443_s1 = inlined_call_operand.vmem [shape: bf16[2,10,10,10,4], index: 1, kind: input, shape index: {}, may-alias: {0,1,2}]   ;;  %s5444_s2 = inlined_call_operand.vmem [shape: bf16[2,10,10,10,4], index: 2, kind: input, shape index: {}, may-alias: {0,1,2}]   ;;  %s5445_s3 = inlined_call_operand.vmem [shape: bf16[27,4,128], index: 3, kind: input, shape index: {}]   ;;  %s5446_s4 = inlined_call_operand.vmem [shape: f32[1,128], index: 4, kind: input, shape index: {}]   ;;  %s5447_s5 = inlined_call_operand.vmem [shape: f32[2,8,8,8,128], index: 5, kind: output, shape index: {}]  }
   0x1   :  { %s4307_s20 = smov 0   ;;  %s4309_s21 = smov 0  }
   0x2   :  { %s4311_s22 = smov 0  }
   0x3 LB: > { %s24_s23 = sadd.s32 1, %s4263_s20  ;;  %s27_s24 = sadd.s32 1, %s4267_s21  ;;  %s4271_s22 = sphi %s4311_s22, %s15_s22   ;;  %s4267_s21 = sphi %s4309_s21, %s5596_s21   ;;  %s4263_s20 = sphi %s4307_s20, %s5595_s20   ;;  %s4259_s19 = sphi %s4305_s19, %s5594_s19   ;;  %s4255_s18 = sphi %s4303_s18, %s5593_s18  }
   0x4   : > { %p25_p0 = scmp.ge.s32.totalorder %s24_s23, 8  ;;  %p3345_p1 = scmp.ge.s32.totalorder %s4271_s22, 1 }
   0x5   : > { %p247_p2 = scmp.lt.s32.totalorder %s4271_s22, 17 }
   0x6   : > { %s5598_s23 = smov (%p25_p0, %s24_s23), 0  ;;  %s5600_s24 = smov (!%p25_p0, %s27_s24), %s4267_s21 }
   0x7   : > { %p248_p3 = pnand %p3345_p1, %p247_p2  ;;  %p29_p4 = scmp.ge.s32.totalorder %s5600_s24, 2 }
   0x9   : > { %s5602_s24 = smov (%p29_p4, %s5600_s24), 0  ;;  %251 = sbr.rel (%p248_p3) target bundleno = 478 (0x1de), region = 40 }
  0x10   : > { %v3356_v0 = vld [vmem:[%s5445_s3 + $0x2] sm:$0x3]  ;;  %vm457_vm0 = vcmask 1041408   ;;  %v3433_v1 = vld [vmem:[%s5445_s3 + $0x1a] sm:$0x3]  ;;  %p303_p5 = scmp.lt.s32.totalorder %s4259_s19, 1 }
  0x11   : > { %4131 = vmatprep.subr.msk.bf16.mxu1 %vm457_vm0, %v3356_v0  ;;  %4144 = vmatprep.subr.msk.bf16.mxu0 %vm457_vm0, %v3433_v1  ;;  %v459_v2 = vsel %vm457_vm0, %v3356_v0, 0  ;;  %v4345_v3 = vsel %vm457_vm0, %v3433_v1, 0  ;;  %p305_p6 = scmp.lt.s32.totalorder %s4255_s18, 9  ;;  %s312_s29 = sadd.s32 1, %s4255_s18  ;;  %v388_v4 = vld [vmem:[%s5445_s3] sm:$0x3] }
  0x12   : > { %5503 = vst [vmem:[#allocation2_spill] sm:$0xff] %v4345_v3  ;;  %3652 = vmatpush3.bf16.msra.mxu1 %v459_v2  ;;  %3782 = vmatpush3.bf16.msra.mxu0 %v4345_v3  ;;  %s5604_s19 = smov (!%p303_p5, %s4259_s19), 1  ;;  %v4358_v5 = vld [vmem:[%s5445_s3 + $0x1c] sm:$0x3]  ;;  %p315_p7 = scmp.lt.s32.totalorder %s312_s29, 9  ;;  %vm405_vm1 = vcmask 1046528  }
  0x13   : > { %s306_s9 = scalar_select %p305_p6, %s4255_s18, 9  ;;  %4132 = vmatprep.subr.msk.bf16.mxu1 %vm457_vm0, %v388_v4  ;;  %4146 = vmatprep.subr.msk.bf16.mxu0 %vm457_vm0, %v4358_v5  ;;  %vm444_vm2 = vcmask 31744   ;;  %v539_v36 = vsel %vm457_vm0, %v388_v4, 0  ;;  %v4456_v42 = vld [vmem:[%s5445_s3 + $0x4] sm:$0x3]  ;;  %vm606_vm3 = vcmask 1045504  }
  0x14   : > { %s4365_s10 = smul.u32 200, %s5604_s19  ;;  %s5606_s29 = smov (!%p315_p7, %s312_s29), 9 }
  0x15   : > { %s4159_s11 = smul.u32 20, %s306_s9  ;;  %p336_p9 = scmp.lt.s32.totalorder %s4255_s18, 7 }
  0x16   : > { %s4161_s14 = smul.u32 20, %s5606_s29 }
  0x17   : > { %s309_s12 = sadd.s32 %s4365_s10, %s4159_s11 }
  0x18   : > { %s3346_s13 = sshll.u32 %s309_s12, 2  ;;  %s319_s25 = sadd.s32 %s4161_s14, %s4365_s10 }
  0x19   : > { %s4371_s17 = scalar_lea.vmem %s5442_s0, %s3346_s13  ;;  %s3347_s26 = sshll.u32 %s319_s25, 2 }
  0x1a   : > { %v4374_v6 = vld [vmem:[%s4371_s17] sm:$0xf]  ;;  %v4377_v7 = vld [vmem:[%s4371_s17 + $0x4] sm:$0x1]  ;;  %v4380_v8 = vld [vmem:[%s4371_s17 + $0x8] sm:$0xf]  ;;  %s4426_s29 = scalar_lea.vmem %s5443_s1, %s3347_s26 }
  0x1b   : > { %v4384_v9 = vld [vmem:[%s4371_s17 + $0xc] sm:$0x1]  ;;  %v4387_v10 = vld [vmem:[%s4371_s17 + $0x10] sm:$0xf]  ;;  %v4390_v11 = vld [vmem:[%s4371_s17 + $0x14] sm:$0x1]  ;;  %v5465_v12 = vunpack.c.l.bf16 %v4374_v6  ;;  %v5464_v13 = vunpack.c.l.bf16 %v4377_v7  ;;  %v5463_v14 = vunpack.c.l.bf16 %v4380_v8 }
  0x1c   : > { %v4396_v15 = vld [vmem:[%s4371_s17 + $0x18] sm:$0xf]  ;;  %v4399_v16 = vld [vmem:[%s4371_s17 + $0x1c] sm:$0x1]  ;;  %v5458_v17 = vunpack.c.l.bf16 %v4384_v9  ;;  %v5455_v18 = vunpack.c.l.bf16 %v4387_v10  ;;  %v5454_v19 = vunpack.c.l.bf16 %v4390_v11  ;;  %v4407_v22 = vld [vmem:[%s4371_s17 + $0x20] sm:$0xf] }
  0x1d   : > { %v5453_v20 = vunpack.c.l.bf16 %v4396_v15  ;;  %v5452_v21 = vunpack.c.l.bf16 %v4399_v16  ;;  %v406_v23 = vrot.slane %v5465_v12, 1  ;;  %v407_v24 = vrot.slane %v5464_v13, 1  ;;  %v4429_v30 = vld [vmem:[%s4371_s17 + $0x24] sm:$0x1]  ;;  %v4450_v40 = vld [vmem:[%s4426_s29 + $0x8] sm:$0xf] }
  0x1e   : > { %v409_v25 = vrot.slane %v5463_v14, 1  ;;  %v410_v26 = vrot.slane %v5458_v17, 1  ;;  %v412_v27 = vrot.slane %v5455_v18, 1  ;;  %v413_v28 = vrot.slane %v5454_v19, 1  ;;  %v4447_v39 = vld [vmem:[%s4426_s29 + $0x4] sm:$0x1] }
  0x1f   : > { %v415_v29 = vrot.slane %v5453_v20, 1  ;;  %v408_v31 = vsel %vm405_vm1, %v406_v23, %v407_v24  ;;  %v416_v32 = vrot.slane %v5452_v21, 1  ;;  %v5451_v33 = vunpack.c.l.bf16 %v4407_v22  ;;  %5504 = vst [vmem:[#allocation3_spill] sm:$0xff] %v4450_v40  ;;  %v1284_v41 = vld [vmem:[%s4426_s29 + $0xc] sm:$0x1]  ;;  %s323_s26 = sadd.s32 2, %s4255_s18 }
  0x20   : > { %v4436_v34 = vsel %vm405_vm1, %v409_v25, %v410_v26  ;;  %v4439_v35 = vsel %vm405_vm1, %v412_v27, %v413_v28  ;;  %v5450_v43 = vunpack.c.l.bf16 %v4429_v30  ;;  %v4464_v45 = vld [vmem:[%s4426_s29 + $0x10] sm:$0xf]  ;;  %v1286_v46 = vld [vmem:[%s4426_s29 + $0x14] sm:$0x1]  ;;  %v4468_v47 = vld [vmem:[%s4426_s29 + $0x18] sm:$0xf]  ;;  %v5448_v55 = vunpack.c.l.bf16 %v4447_v39 }
  0x21   : > { %v4443_v37 = vsel %vm405_vm1, %v415_v29, %v416_v32  ;;  %v438_v38 = vpack.c.bf16 %v4436_v34, %v408_v31  ;;  %5506 = vst [vmem:[#allocation5_spill] sm:$0xff] %v4468_v47  ;;  %v4474_v49 = vld [vmem:[%s4426_s29] sm:$0xf]  ;;  %v1288_v50 = vld [vmem:[%s4426_s29 + $0x1c] sm:$0x1]  ;;  %v418_v52 = vrot.slane %v5451_v33, 1  ;;  %v1303_v56 = vunpack.c.l.bf16 %v4450_v40 }
  0x22   : > { %v4461_v44 = vpack.c.bf16 %v4443_v37, %v4439_v35  ;;  %v4478_v51 = vld [vmem:[%s4426_s29 + $0x20] sm:$0xf]  ;;  %v1290_v53 = vld [vmem:[%s4426_s29 + $0x24] sm:$0x1]  ;;  %v5449_v54 = vunpack.c.l.bf16 %v4474_v49  ;;  %v1304_v57 = vunpack.c.l.bf16 %v1284_v41  ;;  %v1305_v58 = vunpack.c.l.bf16 %v4464_v45  ;;  %v4496_v1 = vld [vmem:[%s4426_s29 + $0x28] sm:$0xf] }
  0x23   : > { %3653 = vmatprep.mubr.msk.bf16.mxu1 %vm444_vm2, %v438_v38  ;;  %5507 = vst [vmem:[#allocation6_spill] sm:$0xff] %v4478_v51  ;;  %v1306_v59 = vunpack.c.l.bf16 %v1286_v46  ;;  %v1307_v60 = vunpack.c.l.bf16 %v4468_v47  ;;  %v419_v61 = vrot.slane %v5450_v43, 1  ;;  %v1308_v62 = vunpack.c.l.bf16 %v1288_v50  ;;  %5508 = vst [vmem:[#allocation7_spill] sm:$0xff] %v4496_v1  ;;  %v4503_v24 = vld [vmem:[%s4426_s29 + $0x2c] sm:$0x1]  ;;  %p326_p8 = scmp.lt.s32.totalorder %s323_s26, 9 }
  0x24   : > { %5505 = vst [vmem:[#allocation4_spill] sm:$0xff] %v4461_v44  ;;  %3654 = vmatmul.mubr.msk.bf16.vlgmr.msra.gmra.mrb[0].mxu1 %vm444_vm2, %v4461_v44  ;;  %v1309_v63 = vunpack.c.l.bf16 %v4478_v51  ;;  %v1310_v0 = vunpack.c.l.bf16 %v1290_v53  ;;  %v1431_v2 = vrot.slane %v5449_v54, 1  ;;  %v1432_v4 = vrot.slane %v5448_v55, 1  ;;  %v4539_v54 = vld [vmem:[%s4371_s17 + $0x34] sm:$0x1]  ;;  %s5610_s18 = smov (!%p336_p9, %s4255_s18), 7 }
  0x25   : > { %3662 = vmatpush3.bf16.msra.mxu1 %v539_v36  ;;  %v1434_v23 = vrot.slane %v1303_v56, 1  ;;  %v1435_v25 = vrot.slane %v1304_v57, 1  ;;  %v1437_v26 = vrot.slane %v1305_v58, 1  ;;  %v1438_v27 = vrot.slane %v1306_v59, 1  ;;  %v4545_v21 = vld [vmem:[%s4371_s17 + $0x3c] sm:$0x1] }
  0x26   : > { %4133 = vmatprep.subr.msk.bf16.mxu1 %vm457_vm0, %v4456_v42  ;;  %v1440_v28 = vrot.slane %v1307_v60, 1  ;;  %v4506_v29 = vsel %vm405_vm1, %v1431_v2, %v1432_v4  ;;  %v1441_v31 = vrot.slane %v1308_v62, 1  ;;  %v1443_v32 = vrot.slane %v1309_v63, 1  ;;  %v4527_v4 = vld [vmem:[%s4371_s17 + $0x2c] sm:$0x1]  ;;  %s5608_s26 = smov (!%p326_p8, %s323_s26), 9 }
  0x27   : > { %5509 = vst [vmem:[#allocation8_spill] sm:$0xff] %v4506_v29  ;;  %v1444_v36 = vrot.slane %v1310_v0, 1  ;;  %v4509_v38 = vsel %vm405_vm1, %v418_v52, %v419_v61  ;;  %v4512_v41 = vsel %vm405_vm1, %v1434_v23, %v1435_v25  ;;  %v1900_v46 = vsel %vm457_vm0, %v4358_v5, 0  ;;  %v4524_v61 = vld [vmem:[%s4371_s17 + $0x28] sm:$0xf]  ;;  %s4162_s7 = smul.u32 20, %s5608_s26 }
  0x28   : > { %5510 = vst [vmem:[#allocation9_spill] sm:$0xff] %v4512_v41  ;;  %v5467_v50 = vunpack.c.l.bf16 %v4496_v1  ;;  %v5466_v53 = vunpack.c.l.bf16 %v4503_v24  ;;  %v4519_v2 = vsel %vm405_vm1, %v1437_v26, %v1438_v27  ;;  %v4530_v23 = vld [vmem:[%s4371_s17 + $0x30] sm:$0xf]  ;;  %v4533_v25 = vsel %vm405_vm1, %v1440_v28, %v1441_v31  ;;  %v4542_v26 = vld [vmem:[%s4371_s17 + $0x38] sm:$0xf] }
  0x29   : > { %v4536_v5 = vsel %vm405_vm1, %v1443_v32, %v1444_v36  ;;  %v1560_v55 = vrot.slane %v1303_v56, 2  ;;  %v1561_v48 = vrot.slane %v1304_v57, 2  ;;  %v1563_v27 = vrot.slane %v1305_v58, 2  ;;  %v3444_v32 = vld [vmem:[%s5445_s3 + $0x1e] sm:$0x3]  ;;  %s330_s8 = sadd.s32 %s4162_s7, %s4365_s10 }
  0x2a   : > { %v1564_v52 = vrot.slane %v1306_v59, 2  ;;  %v1566_v43 = vrot.slane %v1307_v60, 2  ;;  %v1567_v33 = vrot.slane %v1308_v62, 2  ;;  %v1569_v20 = vrot.slane %v1309_v63, 2  ;;  %v4567_v36 = vld [vmem:[%s4426_s29 + $0x30] sm:$0xf] }
  0x2b   : > { %v1570_v19 = vrot.slane %v1310_v0, 2  ;;  %v1783_v56 = vpack.c.bf16 %v4519_v2, %v4512_v41  ;;  %v1784_v57 = vpack.c.bf16 %v4536_v5, %v4533_v25  ;;  %v5456_v31 = vunpack.c.l.bf16 %v4524_v61  ;;  %5512 = vst [vmem:[#allocation11_spill] sm:$0xff] %v4567_v36  ;;  %v4588_v17 = vld [vmem:[%s4426_s29 + $0x34] sm:$0x1]  ;;  %s3348_s9 = sshll.u32 %s330_s8, 2 }
  0x2c   : > { %v5457_v58 = vunpack.c.l.bf16 %v4527_v4  ;;  %v5459_v59 = vunpack.c.l.bf16 %v4530_v23  ;;  %v5462_v60 = vunpack.c.l.bf16 %v4539_v54  ;;  %v5461_v62 = vunpack.c.l.bf16 %v4542_v26  ;;  %s4917_s12 = scalar_lea.vmem %s5444_s2, %s3348_s9 }
  0x2d   : > { %3783 = vmatprep.mubr.msk.bf16.mxu0 %vm444_vm2, %v1783_v56  ;;  %v5460_v63 = vunpack.c.l.bf16 %v4545_v21  ;;  %v4561_v0 = vsel %vm606_vm3, %v1560_v55, %v1561_v48  ;;  %v421_v56 = vrot.slane %v5456_v31, 1  ;;  %v4577_v55 = vsel %vm606_vm3, %v1563_v27, %v1564_v52 }
  0x2e   : > { %5511 = vst [vmem:[#allocation10_spill] sm:$0xff] %v4561_v0  ;;  %3784 = vmatmul.mubr.msk.bf16.vlgmr.msra.gmra.mrb[0].mxu0 %vm444_vm2, %v1784_v57  ;;  %v422_v28 = vrot.slane %v5457_v58, 1  ;;  %v424_v48 = vrot.slane %v5459_v59, 1  ;;  %v425_v18 = vrot.slane %v5462_v60, 1  ;;  %v427_v57 = vrot.slane %v5461_v62, 1 }
  0x2f   : > { %3792 = vmatpush3.bf16.msra.mxu0 %v1900_v46  ;;  %v428_v31 = vrot.slane %v5460_v63, 1  ;;  %v1881_v58 = vpack.c.bf16 %v4577_v55, %v4561_v0  ;;  %v4595_v46 = vsel %vm606_vm3, %v1566_v43, %v1567_v33  ;;  %v3352_v52 = vcombine.low %v4374_v6, %v4380_v8  ;;  %v4601_v63 = vld [vmem:[%s4426_s29 + $0x38] sm:$0xf]  ;;  %v1296_v62 = vld [vmem:[%s4426_s29 + $0x3c] sm:$0x1] }
  0x30   : > { %v4591_v59 = vsel %vm405_vm1, %v421_v56, %v422_v28  ;;  %4147 = vmatprep.subr.msk.bf16.mxu0 %vm457_vm0, %v3444_v32  ;;  %5514 = vst [vmem:[#allocation13_spill] sm:$0xff] %v4601_v63  ;;  %v4605_v60 = vld [vmem:[%s4426_s29 + $0x40] sm:$0xf]  ;;  %v4612_v28 = vsel %vm405_vm1, %v424_v48, %v425_v18  ;;  %v4619_v43 = vsel %vm606_vm3, %v1569_v20, %v1570_v19  ;;  %v1298_v56 = vld [vmem:[%s4426_s29 + $0x44] sm:$0x1]  ;;  %v5472_v12 = vunpack.c.l.bf16 %v4588_v17 }
  0x31   : > { %5513 = vst [vmem:[#allocation12_spill] sm:$0xff] %v4591_v59  ;;  %5515 = vst [vmem:[#allocation14_spill] sm:$0xff] %v4605_v60  ;;  %v4609_v14 = vpack.c.bf16 %v4591_v59, %v4509_v38  ;;  %v4615_v33 = vsel %vm405_vm1, %v427_v57, %v428_v31  ;;  %3793 = vmatprep.mubr.msk.bf16.mxu0 %vm444_vm2, %v1881_v58  ;;  %v1572_v27 = vrot.slane %v5467_v50, 2  ;;  %v1573_v18 = vrot.slane %v5466_v53, 2 }
  0x32   : > { %5517 = vst [vmem:[#allocation16_spill] sm:$0xff] %v4612_v28  ;;  %v4624_v13 = vpack.c.bf16 %v4615_v33, %v4612_v28  ;;  %v5519_v31 = vunpack.c.l.bf16 %v4567_v36  ;;  %v1315_v20 = vunpack.c.l.bf16 %v4601_v63  ;;  %v1316_v58 = vunpack.c.l.bf16 %v1296_v62 }
  0x33   : > { %5516 = vst [vmem:[#allocation15_spill] sm:$0xff] %v4609_v14  ;;  %3657 = vmatprep.mubr.msk.bf16.mxu1 %vm444_vm2, %v4609_v14  ;;  %v1317_v48 = vunpack.c.l.bf16 %v4605_v60  ;;  %v4640_v57 = vsel %vm606_vm3, %v1572_v27, %v1573_v18  ;;  %v1576_v53 = vrot.slane %v5472_v12, 2  ;;  %v1318_v50 = vunpack.c.l.bf16 %v1298_v56 }
  0x34   : > { %5518 = vst [vmem:[#allocation17_spill] sm:$0xff] %v4624_v13  ;;  %v1575_v19 = vrot.slane %v5519_v31, 2  ;;  %3658 = vmatmul.mubr.msk.bf16.gmra.mrb[4].mxu1 %vm444_vm2, %v4624_v13  ;;  %v1882_v31 = vpack.c.bf16 %v4619_v43, %v4595_v46  ;;  %v1578_v62 = vrot.slane %v1315_v20, 2  ;;  %v1579_v41 = vrot.slane %v1316_v58, 2 }
  0x35   : > { %3663 = vmatprep.mubr.msk.bf16.mxu1 %vm444_vm2, %v3352_v52  ;;  %v1877_v40 = vrot.slane %v1317_v48, 2  ;;  %v1878_v27 = vrot.slane %v1318_v50, 2  ;;  %v4654_v18 = vcombine.low %v4387_v10, %v4396_v15  ;;  %v1982_v56 = vsel %vm457_vm0, %v3444_v32, 0 }
  0x36   : > { %v4648_v3 = vsel %vm606_vm3, %v1575_v19, %v1576_v53  ;;  %v658_v52 = vsel %vm457_vm0, %v4456_v42, 0  ;;  %v4661_v53 = vcombine.low %v4407_v22, %v4524_v61  ;;  %v3449_v19 = vld [vmem:[%s5445_s3 + $0x20] sm:$0x3]  ;;  %v5520_v12 = vunpack.c.l.bf16 %v4374_v6 }
  0x37   : > { %v1883_v29 = vpack.c.bf16 %v4648_v3, %v4640_v57  ;;  %v5521_v14 = vunpack.c.l.bf16 %v4377_v7  ;;  %v5522_v28 = vunpack.c.l.bf16 %v4380_v8  ;;  %v5523_v59 = vunpack.c.l.bf16 %v4384_v9  ;;  %v3374_v7 = vld [vmem:[%s5445_s3 + $0x6] sm:$0x3] }
  0x38   : > { %v607_v13 = vrot.slane %v5520_v12, 2  ;;  %v4677_v0 = vsel %vm606_vm3, %v1578_v62, %v1579_v41  ;;  %v4680_v6 = vsel %vm606_vm3, %v1877_v40, %v1878_v27  ;;  %v5524_v9 = vunpack.c.l.bf16 %v4387_v10 }
  0x39   : > { %v608_v44 = vrot.slane %v5521_v14, 2  ;;  %v610_v32 = vrot.slane %v5522_v28, 2  ;;  %v611_v42 = vrot.slane %v5523_v59, 2  ;;  %v5525_v14 = vunpack.c.l.bf16 %v4390_v11 }
  0x3a   : > { %3794 = vmatmul.mubr.msk.bf16.vlgmr.msra.gmra.mrb[0].mxu0 %vm444_vm2, %v1882_v31  ;;  %v613_v12 = vrot.slane %v5524_v9, 2  ;;  %v5526_v28 = vunpack.c.l.bf16 %v4396_v15  ;;  %v4705_v62 = vcombine.low %v4464_v45, %v4468_v47  ;;  %v1452_v11 = vrot.slane %v1315_v20, 1 }
  0x3b   : > { %3802 = vmatpush3.bf16.msra.mxu0 %v1982_v56  ;;  %3797 = vmatprep.mubr.msk.bf16.mxu0 %vm444_vm2, %v1883_v29  ;;  %v614_v40 = vrot.slane %v5525_v14, 2  ;;  %v1884_v29 = vpack.c.bf16 %v4680_v6, %v4677_v0  ;;  %v609_v41 = vsel %vm606_vm3, %v607_v13, %v608_v44  ;;  %v4698_v59 = vsel %vm606_vm3, %v610_v32, %v611_v42  ;;  %v4714_v42 = vld [vmem:[%s4371_s17 + $0x40] sm:$0xf] }
  0x3c   : > { %3664 = vmatmul.mubr.msk.bf16.vlgmr.msra.gmra.mrb[0].mxu1 %vm444_vm2, %v4654_v18  ;;  %4148 = vmatprep.subr.msk.bf16.mxu0 %vm457_vm0, %v3449_v19  ;;  %v616_v31 = vrot.slane %v5526_v28, 2  ;;  %v1453_v27 = vrot.slane %v1316_v58, 1  ;;  %v5527_v56 = vunpack.c.l.bf16 %v4399_v16  ;;  %v4711_v13 = vcombine.low %v4530_v23, %v4542_v26  ;;  %v4723_v16 = vld [vmem:[%s4371_s17 + $0x44] sm:$0x1] }
  0x3d   : > { %3672 = vmatpush3.bf16.msra.mxu1 %v658_v52  ;;  %3667 = vmatprep.mubr.msk.bf16.mxu1 %vm444_vm2, %v4661_v53  ;;  %v1779_v44 = vrot.slane %v1317_v48, 1  ;;  %v1780_v32 = vrot.slane %v1318_v50, 1  ;;  %v639_v9 = vpack.c.bf16 %v4698_v59, %v609_v41  ;;  %v5528_v14 = vunpack.c.l.bf16 %v4407_v22 }
  0x3e   : > { %4134 = vmatprep.subr.msk.bf16.mxu1 %vm457_vm0, %v3374_v7  ;;  %v617_v52 = vrot.slane %v5527_v56, 2  ;;  %v5529_v45 = vunpack.c.l.bf16 %v4429_v30  ;;  %v5482_v58 = vunpack.c.l.bf16 %v4714_v42  ;;  %v5530_v56 = vunpack.c.l.bf16 %v4524_v61 }
  0x3f   : > { %v619_v28 = vrot.slane %v5528_v14, 2  ;;  %v5531_v50 = vunpack.c.l.bf16 %v4527_v4  ;;  %v4731_v41 = vsel %vm405_vm1, %v1452_v11, %v1453_v27  ;;  %v4734_v14 = vsel %vm405_vm1, %v1779_v44, %v1780_v32 }
  0x40   : > { %v620_v20 = vrot.slane %v5529_v45, 2  ;;  %v622_v48 = vrot.slane %v5530_v56, 2  ;;  %5532 = vst [vmem:[#allocation18_spill] sm:$0xff] %v4731_v41  ;;  %5533 = vst [vmem:[#allocation19_spill] sm:$0xff] %v4734_v14  ;;  %v829_v4 = vrot.slane %v5482_v58, 1  ;;  %v4746_v11 = vsel %vm606_vm3, %v613_v12, %v614_v40 }
  0x41   : > { %v623_v47 = vrot.slane %v5531_v50, 2  ;;  %v4750_v27 = vsel %vm606_vm3, %v616_v31, %v617_v52  ;;  %v4754_v44 = vcombine.low %v4478_v51, %v4496_v1  ;;  %v2070_v12 = vsel %vm457_vm0, %v3449_v19, 0 }
  0x42   : > { %3798 = vmatmul.mubr.msk.bf16.gmra.mrb[4].mxu0 %vm444_vm2, %v1884_v29  ;;  %v5481_v29 = vunpack.c.l.bf16 %v4723_v16  ;;  %v4757_v32 = vsel %vm606_vm3, %v619_v28, %v620_v20  ;;  %v4767_v40 = vcombine.low %v4567_v36, %v4601_v63  ;;  %v4771_v31 = vpack.c.bf16 %v4750_v27, %v4746_v11 }
  0x43   : > { %3803 = vmatprep.mubr.msk.bf16.mxu0 %vm444_vm2, %v4705_v62  ;;  %v4760_v45 = vsel %vm606_vm3, %v622_v48, %v623_v47  ;;  %v5534_v52 = vunpack.c.l.bf16 %v4530_v23  ;;  %v5535_v47 = vunpack.c.l.bf16 %v4539_v54  ;;  %v5536_v48 = vunpack.c.l.bf16 %v4542_v26 }
  0x44   : > { %3668 = vmatmul.mubr.msk.bf16.gmra.mrb[4].mxu1 %vm444_vm2, %v4711_v13  ;;  %v830_v56 = vrot.slane %v5481_v29, 1  ;;  %v4782_v19 = vpack.c.bf16 %v4760_v45, %v4757_v32  ;;  %v5537_v30 = vunpack.c.l.bf16 %v4545_v21  ;;  %v3379_v21 = vld [vmem:[%s5445_s3 + $0x8] sm:$0x3]  ;;  %v5539_v58 = vunpack.c.l.bf16 %v4503_v24 }
  0x45   : > { %3673 = vmatprep.mubr.msk.bf16.mxu1 %vm444_vm2, %v639_v9  ;;  %v625_v9 = vrot.slane %v5534_v52, 2  ;;  %v626_v28 = vrot.slane %v5535_v47, 2  ;;  %v628_v50 = vrot.slane %v5536_v48, 2  ;;  %v3454_v52 = vld [vmem:[%s5445_s3 + $0x22] sm:$0x3]  ;;  %v5538_v47 = vunpack.c.l.bf16 %v4496_v1 }
  0x46   : > { %v4778_v20 = vsel %vm405_vm1, %v829_v4, %v830_v56  ;;  %v629_v29 = vrot.slane %v5537_v30, 2  ;;  %v752_v4 = vsel %vm457_vm0, %v3374_v7, 0  ;;  %v1299_v56 = vld [vmem:[%s4426_s29 + $0x48] sm:$0xf]  ;;  %v4821_v54 = vpack.c.bf16 %v4533_v25, %v4519_v2  ;;  %v1300_v1 = vld [vmem:[%s4426_s29 + $0x4c] sm:$0x1] }
  0x47   : > { %v4808_v7 = vsel %vm606_vm3, %v625_v9, %v626_v28  ;;  %v1446_v48 = vrot.slane %v5538_v47, 1  ;;  %v3370_v47 = vcombine.low %v4380_v8, %v4387_v10  ;;  %v1319_v2 = vunpack.c.l.bf16 %v1299_v56 }
  0x48   : > { %v4811_v30 = vsel %vm606_vm3, %v628_v50, %v629_v29  ;;  %v5540_v29 = vunpack.c.l.bf16 %v4567_v36  ;;  %v5541_v50 = vunpack.c.l.bf16 %v4588_v17  ;;  %v1320_v25 = vunpack.c.l.bf16 %v1300_v1 }
  0x49   : > { %v4825_v9 = vpack.c.bf16 %v4811_v30, %v4808_v7  ;;  %v2059_v10 = vrot.slane %v1319_v2, 1  ;;  %v2156_v1 = vsel %vm457_vm0, %v3454_v52, 0 }
  0x4a   : > { %3804 = vmatmul.mubr.msk.bf16.vlgmr.msra.gmra.mrb[0].mxu0 %vm444_vm2, %v4754_v44  ;;  %v1449_v28 = vrot.slane %v5540_v29, 1  ;;  %v1450_v51 = vrot.slane %v5541_v50, 1  ;;  %v5545_v29 = vpack.c.bf16 %v4439_v35, %v4436_v34  ;;  %v4902_v50 = vpack.c.bf16 %v4677_v0, %v4648_v3  ;;  %v3468_v3 = vld [vmem:[%s5445_s3 + $0x26] sm:$0x3]  ;;  %v3390_v0 = vld [vmem:[%s5445_s3 + $0xc] sm:$0x3] }
  0x4b   : > { %3812 = vmatpush3.bf16.msra.mxu0 %v2070_v12  ;;  %3807 = vmatprep.mubr.msk.bf16.mxu0 %vm444_vm2, %v4767_v40  ;;  %v3443_v12 = vcombine.low %v4605_v60, %v1299_v56  ;;  %v2060_v56 = vrot.slane %v1320_v25, 1  ;;  %v834_v34 = vpack.c.bf16 %v4509_v38, %v4443_v37 }
  0x4c   : > { %3674 = vmatmul.mubr.msk.bf16.vlgmr.msra.gmra.mrb[0].mxu1 %vm444_vm2, %v4771_v31  ;;  %4149 = vmatprep.subr.msk.bf16.mxu0 %vm457_vm0, %v3454_v52  ;;  %v4843_v17 = vsel %vm405_vm1, %v1449_v28, %v1450_v51  ;;  %v3371_v51 = vcombine.low %v4396_v15, %v4407_v22  ;;  %v3384_v15 = vld [vmem:[%s5445_s3 + $0xa] sm:$0x3]  ;;  %v2145_v28 = vrot.slane %v1319_v2, 2  ;;  %v4933_v2 = vld [vmem:[%s4917_s12] sm:$0xf] }
  0x4d   : > { %3682 = vmatpush3.bf16.msra.mxu1 %v752_v4  ;;  %3677 = vmatprep.mubr.msk.bf16.mxu1 %vm444_vm2, %v4782_v19  ;;  %v1447_v4 = vrot.slane %v5539_v58, 1  ;;  %5543 = vst [vmem:[#allocation21_spill] sm:$0xff] %v4843_v17  ;;  %v4853_v58 = vpack.c.bf16 %v4731_v41, %v4843_v17  ;;  %v2061_v52 = vsel %vm405_vm1, %v2059_v10, %v2060_v56  ;;  %v950_v37 = vsel %vm457_vm0, %v3384_v15, 0  ;;  %v5030_v56 = vld [vmem:[%s4917_s12 + $0x38] sm:$0xf] }
  0x4e   : > { %4135 = vmatprep.subr.msk.bf16.mxu1 %vm457_vm0, %v3379_v21  ;;  %v2063_v22 = vpack.c.bf16 %v2061_v52, %v4734_v14  ;;  %v4950_v52 = vld [vmem:[%s4917_s12 + $0xc] sm:$0x1]  ;;  %v5077_v14 = vld [vmem:[%s4917_s12 + $0x3c] sm:$0x1]  ;;  %v3482_v17 = vld [vmem:[%s5445_s3 + $0x2a] sm:$0x3] }
  0x4f   : > { %v4836_v24 = vsel %vm405_vm1, %v1446_v48, %v1447_v4  ;;  %v852_v48 = vsel %vm457_vm0, %v3379_v21, 0  ;;  %v5544_v21 = vunpack.c.l.bf16 %v4474_v49 }
  0x50   : > { %5542 = vst [vmem:[#allocation20_spill] sm:$0xff] %v4836_v24  ;;  %v4849_v8 = vpack.c.bf16 %v4836_v24, %v4536_v5  ;;  %v3463_v5 = vld [vmem:[%s5445_s3 + $0x24] sm:$0x3] }
  0x51   : > { %v1557_v4 = vrot.slane %v5544_v21, 2  ;;  %v2290_v35 = vsel %vm457_vm0, %v3463_v5, 0  ;;  %v4969_v21 = vld [vmem:[%s4917_s12 + $0x20] sm:$0xf] }
  0x52   : > { %3808 = vmatmul.mubr.msk.bf16.gmra.mrb[4].mxu0 %vm444_vm2, %v3443_v12  ;;  %v3372_v12 = vcombine.low %v4524_v61, %v4530_v23  ;;  %v4879_v61 = vpack.c.bf16 %v4595_v46, %v4577_v55  ;;  %v3373_v23 = vcombine.low %v4542_v26, %v4714_v42  ;;  %v5546_v55 = vunpack.c.l.bf16 %v4447_v39  ;;  %v5547_v39 = vld [vmem:[#allocation10_spill] sm:$0xff] }
  0x53   : > { %3813 = vmatprep.mubr.msk.bf16.mxu0 %vm444_vm2, %v4821_v54  ;;  %v4898_v26 = vpack.c.bf16 %v4640_v57, %v4619_v43  ;;  %v5548_v43 = vld [vmem:[#allocation12_spill] sm:$0xff] }
  0x54   : > { %3678 = vmatmul.mubr.msk.bf16.gmra.mrb[4].mxu1 %vm444_vm2, %v4825_v9  ;;  %v1558_v46 = vrot.slane %v5546_v55, 2  ;;  %v5549_v57 = vld [vmem:[#allocation16_spill] sm:$0xff]  ;;  %v5485_v55 = vunpack.c.l.bf16 %v4950_v52 }
  0x55   : > { %3683 = vmatprep.mubr.msk.bf16.mxu1 %vm444_vm2, %v3370_v47  ;;  %v2146_v47 = vrot.slane %v1320_v25, 2  ;;  %v4936_v25 = vld [vmem:[%s4917_s12 + $0x8] sm:$0xf] }
  0x56   : > { %v4905_v10 = vsel %vm606_vm3, %v1557_v4, %v1558_v46  ;;  %v4972_v4 = vld [vmem:[%s4917_s12 + $0x28] sm:$0xf] }
  0x57   : > { %v2147_v38 = vsel %vm606_vm3, %v2145_v28, %v2146_v47  ;;  %v4987_v47 = vcombine.low %v4969_v21, %v4972_v4 }
  0x5a   : > { %3814 = vmatmul.mubr.msk.bf16.vlgmr.msra.gmra.mrb[0].mxu0 %vm444_vm2, %v4849_v8 }
  0x5b   : > { %3822 = vmatpush3.bf16.msra.mxu0 %v2156_v1  ;;  %3817 = vmatprep.mubr.msk.bf16.mxu0 %vm444_vm2, %v4853_v58  ;;  %v835_v1 = vpack.c.bf16 %v5549_v57, %v5548_v43  ;;  %v5552_v43 = vunpack.c.l.bf16 %v4723_v16  ;;  %v933_v16 = vpack.c.bf16 %v4808_v7, %v4760_v45  ;;  %v5027_v7 = vld [vmem:[%s4917_s12 + $0x30] sm:$0xf] }
  0x5c   : > { %3684 = vmatmul.mubr.msk.bf16.vlgmr.msra.gmra.mrb[0].mxu1 %vm444_vm2, %v3371_v51  ;;  %4150 = vmatprep.subr.msk.bf16.mxu0 %vm457_vm0, %v3463_v5  ;;  %v2149_v51 = vpack.c.bf16 %v2147_v38, %v4680_v6  ;;  %v931_v5 = vpack.c.bf16 %v4746_v11, %v4698_v59  ;;  %v4958_v6 = vld [vmem:[%s4917_s12 + $0x10] sm:$0xf]  ;;  %v5550_v59 = vpack.c.bf16 %v4778_v20, %v4615_v33  ;;  %v5486_v11 = vunpack.c.l.bf16 %v4936_v25 }
  0x5d   : > { %3692 = vmatpush3.bf16.msra.mxu1 %v852_v48  ;;  %3687 = vmatprep.mubr.msk.bf16.mxu1 %vm444_vm2, %v3372_v12  ;;  %v3459_v12 = vcombine.low %v4933_v2, %v4936_v25  ;;  %v4947_v48 = vld [vmem:[%s4917_s12 + $0x4] sm:$0x1]  ;;  %v932_v33 = vpack.c.bf16 %v4757_v32, %v4750_v27  ;;  %v928_v57 = vrot.slane %v5552_v43, 2  ;;  %v2432_v27 = vsel %vm457_vm0, %v3468_v3, 0 }
  0x5e   : > { %4136 = vmatprep.subr.msk.bf16.mxu1 %vm457_vm0, %v3384_v15  ;;  %v2385_v38 = vrot.slane %v5485_v55, 1  ;;  %v1032_v43 = vsel %vm457_vm0, %v3390_v0, 0  ;;  %v5495_v15 = vunpack.c.l.bf16 %v4969_v21  ;;  %v5051_v45 = vcombine.low %v5027_v7, %v5030_v56 }
  0x62   : > { %3818 = vmatmul.mubr.msk.bf16.gmra.mrb[4].mxu0 %vm444_vm2, %v2063_v22  ;;  %v5488_v22 = vunpack.c.l.bf16 %v4933_v2 }
  0x63   : > { %3823 = vmatprep.mubr.msk.bf16.mxu0 %vm444_vm2, %v4879_v61 }
  0x64   : > { %3688 = vmatmul.mubr.msk.bf16.gmra.mrb[4].mxu1 %vm444_vm2, %v3373_v23  ;;  %v4961_v23 = vld [vmem:[%s4917_s12 + $0x18] sm:$0xf]  ;;  %v2381_v28 = vrot.slane %v5488_v22, 1 }
  0x65   : > { %3693 = vmatprep.mubr.msk.bf16.mxu1 %vm444_vm2, %v5545_v29  ;;  %v5487_v29 = vunpack.c.l.bf16 %v4947_v48  ;;  %v4981_v46 = vcombine.low %v4958_v6, %v4961_v23 }
  0x67   : > { %v2382_v32 = vrot.slane %v5487_v29, 1 }
  0x6a   : > { %3824 = vmatmul.mubr.msk.bf16.vlgmr.msra.gmra.mrb[0].mxu0 %vm444_vm2, %v4898_v26 }
  0x6b   : > { %3832 = vmatpush3.bf16.msra.mxu0 %v2290_v35  ;;  %3827 = vmatprep.mubr.msk.bf16.mxu0 %vm444_vm2, %v4902_v50 }
  0x6c   : > { %3694 = vmatmul.mubr.msk.bf16.vlgmr.msra.gmra.mrb[0].mxu1 %vm444_vm2, %v834_v34  ;;  %4151 = vmatprep.subr.msk.bf16.mxu0 %vm457_vm0, %v3468_v3  ;;  %v5551_v34 = vunpack.c.l.bf16 %v4714_v42  ;;  %v3473_v3 = vld [vmem:[%s5445_s3 + $0x28] sm:$0x3] }
  0x6d   : > { %3702 = vmatpush3.bf16.msra.mxu1 %v950_v37  ;;  %3697 = vmatprep.mubr.msk.bf16.mxu1 %vm444_vm2, %v835_v1  ;;  %v4994_v1 = vld [vmem:[%s4917_s12 + $0x14] sm:$0x1]  ;;  %v2384_v37 = vrot.slane %v5486_v11, 1 }
  0x6e   : > { %4137 = vmatprep.subr.msk.bf16.mxu1 %vm457_vm0, %v3390_v0  ;;  %v927_v35 = vrot.slane %v5551_v34, 2  ;;  %v5490_v34 = vunpack.c.l.bf16 %v4961_v23  ;;  %v5493_v11 = vunpack.c.l.bf16 %v4994_v1  ;;  %v3395_v0 = vld [vmem:[%s5445_s3 + $0xe] sm:$0x3] }
  0x6f   : > { %v5043_v22 = vsel %vm405_vm1, %v2384_v37, %v2385_v38 }
  0x70   : > { %v5033_v55 = vsel %vm606_vm3, %v927_v35, %v928_v57  ;;  %v2388_v38 = vrot.slane %v5493_v11, 1  ;;  %v5553_v57 = vunpack.c.l.bf16 %v4972_v4  ;;  %v2263_v11 = vunpack.c.l.bf16 %v5027_v7 }
  0x72   : > { %3828 = vmatmul.mubr.msk.bf16.gmra.mrb[4].mxu0 %vm444_vm2, %v2149_v51  ;;  %v5004_v51 = vld [vmem:[%s4917_s12 + $0x1c] sm:$0x1]  ;;  %v2396_v41 = vrot.slane %v5553_v57, 1 }
  0x73   : > { %3833 = vmatprep.mubr.msk.bf16.mxu0 %vm444_vm2, %v3459_v12  ;;  %v5012_v12 = vld [vmem:[%s4917_s12 + $0x24] sm:$0x1]  ;;  %v5494_v29 = vunpack.c.l.bf16 %v5004_v51 }
  0x74   : > { %3698 = vmatmul.mubr.msk.bf16.gmra.mrb[4].mxu1 %vm444_vm2, %v5550_v59  ;;  %v5489_v59 = vunpack.c.l.bf16 %v4958_v6  ;;  %v5496_v35 = vunpack.c.l.bf16 %v5012_v12 }
  0x75   : > { %3703 = vmatprep.mubr.msk.bf16.mxu1 %vm444_vm2, %v931_v5  ;;  %v5015_v5 = vld [vmem:[%s4917_s12 + $0x2c] sm:$0x1] }
  0x7a   : > { %3834 = vmatmul.mubr.msk.bf16.vlgmr.msra.gmra.mrb[0].mxu0 %vm444_vm2, %v4981_v46 }
  0x7b   : > { %3842 = vmatpush3.bf16.msra.mxu0 %v2432_v27  ;;  %3837 = vmatprep.mubr.msk.bf16.mxu0 %vm444_vm2, %v4987_v47  ;;  %v2383_v27 = vsel %vm405_vm1, %v2381_v28, %v2382_v32  ;;  %v2390_v28 = vrot.slane %v5490_v34, 1  ;;  %v934_v32 = vpack.c.bf16 %v5033_v55, %v4811_v30  ;;  %v2394_v34 = vrot.slane %v5496_v35, 1 }
  0x7c   : > { %3704 = vmatmul.mubr.msk.bf16.vlgmr.msra.gmra.mrb[0].mxu1 %vm444_vm2, %v932_v33  ;;  %4152 = vmatprep.subr.msk.bf16.mxu0 %vm457_vm0, %v3473_v3  ;;  %v2387_v33 = vrot.slane %v5489_v59, 1  ;;  %v2413_v37 = vpack.c.bf16 %v5043_v22, %v2383_v27  ;;  %v2393_v59 = vrot.slane %v5495_v15, 1  ;;  %v5554_v30 = vunpack.c.l.bf16 %v5015_v5 }
  0x7d   : > { %3712 = vmatpush3.bf16.msra.mxu1 %v1032_v43  ;;  %3707 = vmatprep.mubr.msk.bf16.mxu1 %vm444_vm2, %v933_v16  ;;  %v2391_v16 = vrot.slane %v5494_v29, 1  ;;  %v5066_v43 = vld [vmem:[%s4917_s12 + $0x34] sm:$0x1] }
  0x7e   : > { %4138 = vmatprep.subr.msk.bf16.mxu1 %vm457_vm0, %v3395_v0  ;;  %v2397_v27 = vrot.slane %v5554_v30, 1  ;;  %v5085_v15 = vsel %vm405_vm1, %v2387_v33, %v2388_v38  ;;  %v2264_v57 = vunpack.c.l.bf16 %v5066_v43  ;;  %v2266_v30 = vunpack.c.l.bf16 %v5077_v14 }
  0x7f   : > { %v5088_v35 = vsel %vm405_vm1, %v2390_v28, %v2391_v16  ;;  %v5094_v60 = vsel %vm405_vm1, %v2393_v59, %v2394_v34  ;;  %v5555_v33 = vunpack.c.l.bf16 %v4933_v2  ;;  %v2399_v38 = vrot.slane %v2263_v11, 1 }
  0x80   : > { %v5097_v29 = vsel %vm405_vm1, %v2396_v41, %v2397_v27  ;;  %v5105_v28 = vpack.c.bf16 %v5088_v35, %v5085_v15  ;;  %v2400_v59 = vrot.slane %v2264_v57, 1  ;;  %v5557_v41 = vunpack.c.l.bf16 %v5030_v56 }
  0x81   : > { %v5109_v14 = vpack.c.bf16 %v5097_v29, %v5094_v60  ;;  %v5558_v2 = vunpack.c.l.bf16 %v4947_v48  ;;  %v5559_v43 = vunpack.c.l.bf16 %v4936_v25 }
  0x82   : > { %3838 = vmatmul.mubr.msk.bf16.gmra.mrb[4].mxu0 %vm444_vm2, %v5051_v45  ;;  %v2402_v34 = vrot.slane %v5557_v41, 1  ;;  %v1120_v41 = vsel %vm457_vm0, %v3395_v0, 0  ;;  %v5129_v48 = vsel %vm405_vm1, %v2399_v38, %v2400_v59 }
  0x83   : > { %3843 = vmatprep.mubr.msk.bf16.mxu0 %vm444_vm2, %v2413_v37  ;;  %v2507_v37 = vrot.slane %v5555_v33, 2  ;;  %5556 = vst [vmem:[#allocation10_spill] sm:$0xff] %v5109_v14  ;;  %v2508_v16 = vrot.slane %v5558_v2, 2  ;;  %v2510_v27 = vrot.slane %v5559_v43, 2  ;;  %v5560_v33 = vunpack.c.l.bf16 %v4950_v52  ;;  %v5135_v52 = vld [vmem:[%s4371_s17 + $0x48] sm:$0xf] }
  0x84   : > { %3708 = vmatmul.mubr.msk.bf16.gmra.mrb[4].mxu1 %vm444_vm2, %v934_v32  ;;  %v2403_v32 = vrot.slane %v2266_v30, 1  ;;  %v3400_v2 = vld [vmem:[%s5445_s3 + $0x10] sm:$0x3]  ;;  %v3389_v59 = vcombine.low %v4714_v42, %v5135_v52  ;;  %v5564_v43 = vunpack.c.l.bf16 %v5004_v51  ;;  %v5566_v42 = vunpack.c.l.bf16 %v5012_v12 }
  0x85   : > { %3713 = vmatprep.mubr.msk.bf16.mxu1 %vm444_vm2, %v4654_v18  ;;  %v2558_v18 = vsel %vm457_vm0, %v3473_v3, 0  ;;  %v2511_v63 = vrot.slane %v5560_v33, 2  ;;  %v2509_v0 = vsel %vm606_vm3, %v2507_v37, %v2508_v16  ;;  %v5563_v16 = vunpack.c.l.bf16 %v4961_v23 }
  0x86   : > { %v5132_v3 = vsel %vm405_vm1, %v2402_v34, %v2403_v32  ;;  %v5562_v34 = vunpack.c.l.bf16 %v4994_v1  ;;  %v5565_v33 = vunpack.c.l.bf16 %v4969_v21  ;;  %v2520_v24 = vrot.slane %v5566_v42, 2  ;;  %v363_v1 = vld [vmem:[%s4371_s17 + $0x4c] sm:$0x1] }
  0x87   : > { %v5151_v38 = vpack.c.bf16 %v5132_v3, %v5129_v48  ;;  %v5571_v42 = vld [vmem:[#allocation15_spill] sm:$0xff] }
  0x88   : > { %v2514_v32 = vrot.slane %v5562_v34, 2 }
  0x8a   : > { %3844 = vmatmul.mubr.msk.bf16.vlgmr.msra.gmra.mrb[0].mxu0 %vm444_vm2, %v5105_v28 }
  0x8b   : > { %3852 = vmatpush3.bf16.msra.mxu0 %v2558_v18  ;;  %3847 = vmatprep.mubr.msk.bf16.mxu0 %vm444_vm2, %v5109_v14  ;;  %v5144_v18 = vsel %vm606_vm3, %v2510_v27, %v2511_v63  ;;  %v2517_v27 = vrot.slane %v5564_v43, 2  ;;  %v5569_v43 = vld [vmem:[#allocation4_spill] sm:$0xff] }
  0x8c   : > { %3714 = vmatmul.mubr.msk.bf16.vlgmr.msra.gmra.mrb[0].mxu1 %vm444_vm2, %v4661_v53  ;;  %4153 = vmatprep.subr.msk.bf16.mxu0 %vm457_vm0, %v3482_v17  ;;  %v5561_v53 = vunpack.c.l.bf16 %v4958_v6  ;;  %v2539_v63 = vpack.c.bf16 %v5144_v18, %v2509_v0  ;;  %v5568_v0 = vunpack.c.l.bf16 %v5015_v5 }
  0x8d   : > { %3722 = vmatpush3.bf16.msra.mxu1 %v1120_v41  ;;  %3717 = vmatprep.mubr.msk.bf16.mxu1 %vm444_vm2, %v4711_v13  ;;  %v2516_v13 = vrot.slane %v5563_v16, 2  ;;  %v2519_v41 = vrot.slane %v5565_v33, 2  ;;  %v382_v16 = vunpack.c.l.bf16 %v5135_v52  ;;  %v2652_v52 = vsel %vm457_vm0, %v3482_v17, 0 }
  0x8e   : > { %v2513_v37 = vrot.slane %v5561_v53, 2  ;;  %4139 = vmatprep.subr.msk.bf16.mxu1 %vm457_vm0, %v3400_v2  ;;  %v5567_v53 = vunpack.c.l.bf16 %v4972_v4  ;;  %v2523_v36 = vrot.slane %v5568_v0, 2 }
  0x8f   : > { %v5181_v34 = vsel %vm606_vm3, %v2516_v13, %v2517_v27  ;;  %v5185_v12 = vsel %vm606_vm3, %v2519_v41, %v2520_v24  ;;  %v2526_v24 = vrot.slane %v2264_v57, 2  ;;  %v5570_v13 = vunpack.c.l.bf16 %v5030_v56  ;;  %v3487_v41 = vld [vmem:[%s5445_s3 + $0x2c] sm:$0x3] }
  0x90   : > { %v2522_v14 = vrot.slane %v5567_v53, 2  ;;  %v5178_v51 = vsel %vm606_vm3, %v2513_v37, %v2514_v32  ;;  %v2525_v32 = vrot.slane %v2263_v11, 2  ;;  %v1109_v27 = vrot.slane %v382_v16, 1 }
  0x91   : > { %v5195_v37 = vpack.c.bf16 %v5181_v34, %v5178_v51  ;;  %v1206_v11 = vsel %vm457_vm0, %v3400_v2, 0  ;;  %v5572_v2 = vld [vmem:[#allocation17_spill] sm:$0xff] }
  0x92   : > { %3848 = vmatmul.mubr.msk.bf16.gmra.mrb[4].mxu0 %vm444_vm2, %v5151_v38  ;;  %v5188_v5 = vsel %vm606_vm3, %v2522_v14, %v2523_v36  ;;  %v2528_v36 = vrot.slane %v5570_v13, 2  ;;  %v2529_v14 = vrot.slane %v2266_v30, 2  ;;  %v5213_v57 = vsel %vm606_vm3, %v2525_v32, %v2526_v24  ;;  %v3409_v30 = vld [vmem:[%s5445_s3 + $0x12] sm:$0x3]  ;;  %v3492_v13 = vld [vmem:[%s5445_s3 + $0x2e] sm:$0x3] }
  0x93   : > { %3853 = vmatprep.mubr.msk.bf16.mxu0 %vm444_vm2, %v2539_v63  ;;  %v383_v63 = vunpack.c.l.bf16 %v363_v1  ;;  %v3478_v1 = vcombine.low %v4936_v25, %v4958_v6  ;;  %v3479_v32 = vcombine.low %v4961_v23, %v4969_v21  ;;  %v3480_v24 = vcombine.low %v4972_v4, %v5027_v7  ;;  %v3414_v23 = vld [vmem:[%s5445_s3 + $0x14] sm:$0x3] }
  0x94   : > { %3718 = vmatmul.mubr.msk.bf16.gmra.mrb[4].mxu1 %vm444_vm2, %v3389_v59  ;;  %v5199_v59 = vpack.c.bf16 %v5188_v5, %v5185_v12  ;;  %v5216_v17 = vsel %vm606_vm3, %v2528_v36, %v2529_v14  ;;  %v2752_v25 = vsel %vm457_vm0, %v3487_v41, 0  ;;  %v1195_v6 = vrot.slane %v382_v16, 2 }
  0x95   : > { %3723 = vmatprep.mubr.msk.bf16.mxu1 %vm444_vm2, %v5569_v43  ;;  %v1110_v33 = vrot.slane %v383_v63, 1  ;;  %v5229_v0 = vpack.c.bf16 %v5216_v17, %v5213_v57  ;;  %v1340_v36 = vsel %vm457_vm0, %v3409_v30, 0  ;;  %v2733_v7 = vpack.c.bf16 %v5085_v15, %v5043_v22 }
  0x96   : > { %v2735_v15 = vpack.c.bf16 %v5129_v48, %v5097_v29  ;;  %v3419_v29 = vld [vmem:[%s5445_s3 + $0x16] sm:$0x3]  ;;  %v2831_v48 = vpack.c.bf16 %v5178_v51, %v5144_v18 }
  0x97   : > { %v1111_v53 = vsel %vm405_vm1, %v1109_v27, %v1110_v33  ;;  %v3498_v27 = vld [vmem:[%s5445_s3 + $0x30] sm:$0x3]  ;;  %v1482_v33 = vsel %vm457_vm0, %v3414_v23, 0 }
  0x98   : > { %v1113_v43 = vpack.c.bf16 %v1111_v53, %v4778_v20  ;;  %v1196_v20 = vrot.slane %v383_v63, 2  ;;  %v2248_v63 = vld [vmem:[%s4917_s12 + $0x44] sm:$0x1]  ;;  %v2932_v51 = vsel %vm457_vm0, %v3498_v27, 0 }
  0x9a   : > { %3854 = vmatmul.mubr.msk.bf16.vlgmr.msra.gmra.mrb[0].mxu0 %vm444_vm2, %v5195_v37  ;;  %v1197_v21 = vsel %vm606_vm3, %v1195_v6, %v1196_v20  ;;  %v5580_v6 = vld [vmem:[#allocation10_spill] sm:$0xff]  ;;  %v5581_v20 = vld [vmem:[#allocation5_spill] sm:$0xff] }
  0x9b   : > { %3862 = vmatpush3.bf16.msra.mxu0 %v2652_v52  ;;  %3857 = vmatprep.mubr.msk.bf16.mxu0 %vm444_vm2, %v5199_v59  ;;  %v1199_v16 = vpack.c.bf16 %v1197_v21, %v5033_v55  ;;  %v2268_v52 = vunpack.c.l.bf16 %v2248_v63  ;;  %v5586_v21 = vld [vmem:[#allocation21_spill] sm:$0xff] }
  0x9c   : > { %3724 = vmatmul.mubr.msk.bf16.vlgmr.msra.gmra.mrb[0].mxu1 %vm444_vm2, %v5571_v42  ;;  %4154 = vmatprep.subr.msk.bf16.mxu0 %vm457_vm0, %v3487_v41  ;;  %v5575_v41 = vld [vmem:[#allocation8_spill] sm:$0xff] }
  0x9d   : > { %3732 = vmatpush3.bf16.msra.mxu1 %v1206_v11  ;;  %3727 = vmatprep.mubr.msk.bf16.mxu1 %vm444_vm2, %v5572_v2  ;;  %v2730_v55 = vrot.slane %v2268_v52, 1  ;;  %v2828_v18 = vrot.slane %v2268_v52, 2  ;;  %v3503_v42 = vld [vmem:[%s5445_s3 + $0x32] sm:$0x3]  ;;  %v5591_v52 = vld [vmem:[#allocation18_spill] sm:$0xff] }
  0x9e   : > { %4140 = vmatprep.subr.msk.bf16.mxu1 %vm457_vm0, %v3409_v30 }
  0xa2   : > { %3858 = vmatmul.mubr.msk.bf16.gmra.mrb[4].mxu0 %vm444_vm2, %v5229_v0 }
  0xa3   : > { %3863 = vmatprep.mubr.msk.bf16.mxu0 %vm444_vm2, %v3478_v1 }
  0xa4   : > { %3728 = vmatmul.mubr.msk.bf16.gmra.mrb[4].mxu1 %vm444_vm2, %v1113_v43 }
  0xa5   : > { %3733 = vmatprep.mubr.msk.bf16.mxu1 %vm444_vm2, %v4771_v31  ;;  %v5253_v31 = vld [vmem:[%s4917_s12 + $0x40] sm:$0xf] }
  0xa6   : > { %v3481_v4 = vcombine.low %v5030_v56, %v5253_v31  ;;  %v2734_v56 = vpack.c.bf16 %v5094_v60, %v5088_v35 }
  0xaa   : > { %3864 = vmatmul.mubr.msk.bf16.vlgmr.msra.gmra.mrb[0].mxu0 %vm444_vm2, %v3479_v32  ;;  %v5578_v32 = vld [vmem:[#allocation11_spill] sm:$0xff] }
  0xab   : > { %3872 = vmatpush3.bf16.msra.mxu0 %v2752_v25  ;;  %3867 = vmatprep.mubr.msk.bf16.mxu0 %vm444_vm2, %v3480_v24  ;;  %v5579_v24 = vld [vmem:[#allocation7_spill] sm:$0xff] }
  0xac   : > { %3734 = vmatmul.mubr.msk.bf16.vlgmr.msra.gmra.mrb[0].mxu1 %vm444_vm2, %v4782_v19  ;;  %4155 = vmatprep.subr.msk.bf16.mxu0 %vm457_vm0, %v3492_v13  ;;  %v5573_v19 = vld [vmem:[#allocation3_spill] sm:$0xff]  ;;  %v3426_v25 = vcombine.low %v5579_v24, %v5578_v32 }
  0xad   : > { %3742 = vmatpush3.bf16.msra.mxu1 %v1340_v36  ;;  %3737 = vmatprep.mubr.msk.bf16.mxu1 %vm444_vm2, %v4825_v9  ;;  %v3405_v14 = vcombine.low %v4474_v49, %v5573_v19  ;;  %v2267_v9 = vunpack.c.l.bf16 %v5253_v31  ;;  %v2850_v49 = vsel %vm457_vm0, %v3492_v13, 0  ;;  %v5584_v36 = vld [vmem:[#allocation2_spill] sm:$0xff] }
  0xae   : > { %4141 = vmatprep.subr.msk.bf16.mxu1 %vm457_vm0, %v3414_v23  ;;  %v5585_v23 = vld [vmem:[#allocation20_spill] sm:$0xff] }
  0xaf   : > { %v2729_v22 = vrot.slane %v2267_v9, 1  ;;  %v2827_v30 = vrot.slane %v2267_v9, 2  ;;  %v5590_v9 = vld [vmem:[#allocation19_spill] sm:$0xff] }
  0xb1   : > { %v5290_v60 = vsel %vm405_vm1, %v2729_v22, %v2730_v55 }
  0xb2   : > { %3868 = vmatmul.mubr.msk.bf16.gmra.mrb[4].mxu0 %vm444_vm2, %v3481_v4  ;;  %v2736_v35 = vpack.c.bf16 %v5290_v60, %v5132_v3  ;;  %v2833_v3 = vpack.c.bf16 %v5213_v57, %v5188_v5  ;;  %v3508_v57 = vld [vmem:[%s5445_s3 + $0x34] sm:$0x3]  ;;  %v1785_v4 = vpack.c.bf16 %v5586_v21, %v5585_v23 }
  0xb3   : > { %3873 = vmatprep.mubr.msk.bf16.mxu0 %vm444_vm2, %v2733_v7  ;;  %v3106_v43 = vsel %vm457_vm0, %v3508_v57, 0  ;;  %v5588_v7 = vld [vmem:[#allocation14_spill] sm:$0xff] }
  0xb4   : > { %3738 = vmatmul.mubr.msk.bf16.gmra.mrb[4].mxu1 %vm444_vm2, %v1199_v16 }
  0xb5   : > { %3743 = vmatprep.mubr.msk.bf16.mxu1 %vm444_vm2, %v3405_v14 }
  0xba   : > { %3874 = vmatmul.mubr.msk.bf16.vlgmr.msra.gmra.mrb[0].mxu0 %vm444_vm2, %v2734_v56  ;;  %v5592_v56 = vpack.c.bf16 %v5590_v9, %v5591_v52 }
  0xbb   : > { %3882 = vmatpush3.bf16.msra.mxu0 %v2850_v49  ;;  %3877 = vmatprep.mubr.msk.bf16.mxu0 %vm444_vm2, %v2735_v15 }
  0xbc   : > { %3744 = vmatmul.mubr.msk.bf16.vlgmr.msra.gmra.mrb[0].mxu1 %vm444_vm2, %v4705_v62  ;;  %4156 = vmatprep.subr.msk.bf16.mxu0 %vm457_vm0, %v3498_v27  ;;  %v5574_v62 = vld [vmem:[#allocation9_spill] sm:$0xff] }
  0xbd   : > { %3752 = vmatpush3.bf16.msra.mxu1 %v1482_v33  ;;  %3747 = vmatprep.mubr.msk.bf16.mxu1 %vm444_vm2, %v4754_v44  ;;  %v5576_v11 = vpack.c.bf16 %v5574_v62, %v5575_v41  ;;  %v2832_v44 = vpack.c.bf16 %v5185_v12, %v5181_v34  ;;  %v2829_v34 = vsel %vm606_vm3, %v2827_v30, %v2828_v18  ;;  %v3428_v12 = vld [vmem:[%s5445_s3 + $0x18] sm:$0x3] }
  0xbe   : > { %4142 = vmatprep.subr.msk.bf16.mxu1 %vm457_vm0, %v3419_v29  ;;  %v2834_v5 = vpack.c.bf16 %v2829_v34, %v5216_v17  ;;  %v4232_v17 = vld [vmem:[%s4426_s29 + $0x10] sm:$0xf] }
  0xc2   : > { %3878 = vmatmul.mubr.msk.bf16.gmra.mrb[4].mxu0 %vm444_vm2, %v2736_v35 }
  0xc3   : > { %3883 = vmatprep.mubr.msk.bf16.mxu0 %vm444_vm2, %v2831_v48 }
  0xc4   : > { %3748 = vmatmul.mubr.msk.bf16.gmra.mrb[4].mxu1 %vm444_vm2, %v4767_v40  ;;  %v1608_v40 = vsel %vm457_vm0, %v3419_v29, 0 }
  0xc5   : > { %3753 = vmatprep.mubr.msk.bf16.mxu1 %vm444_vm2, %v5576_v11 }
  0xca   : > { %3884 = vmatmul.mubr.msk.bf16.vlgmr.msra.gmra.mrb[0].mxu0 %vm444_vm2, %v2832_v44 }
  0xcb   : > { %3892 = vmatpush3.bf16.msra.mxu0 %v2932_v51  ;;  %3887 = vmatprep.mubr.msk.bf16.mxu0 %vm444_vm2, %v2833_v3 }
  0xcc   : > { %3754 = vmatmul.mubr.msk.bf16.vlgmr.msra.gmra.mrb[0].mxu1 %vm444_vm2, %v4821_v54  ;;  %4157 = vmatprep.subr.msk.bf16.mxu0 %vm457_vm0, %v3503_v42  ;;  %v5577_v54 = vpack.c.bf16 %v5547_v39, %v4905_v10  ;;  %v4230_v39 = vld [vmem:[%s5445_s3 + $0x1a] sm:$0x3] }
  0xcd   : > { %3762 = vmatpush3.bf16.msra.mxu1 %v1608_v40  ;;  %3757 = vmatprep.mubr.msk.bf16.mxu1 %vm444_vm2, %v4849_v8  ;;  %v3020_v8 = vsel %vm457_vm0, %v3503_v42, 0 }
  0xce   : > { %4143 = vmatprep.subr.msk.bf16.mxu1 %vm457_vm0, %v3428_v12 }
  0xd2   : > { %3888 = vmatmul.mubr.msk.bf16.gmra.mrb[4].mxu0 %vm444_vm2, %v2834_v5 }
  0xd3   : > { %3893 = vmatprep.mubr.msk.bf16.mxu0 %vm444_vm2, %v4981_v46  ;;  %v1702_v46 = vsel %vm457_vm0, %v3428_v12, 0 }
  0xd4   : > { %3758 = vmatmul.mubr.msk.bf16.gmra.mrb[4].mxu1 %vm444_vm2, %v4853_v58  ;;  %v2249_v58 = vld [vmem:[%s4917_s12 + $0x48] sm:$0xf] }
  0xd5   : > { %3763 = vmatprep.mubr.msk.bf16.mxu1 %vm444_vm2, %v5577_v54  ;;  %v3497_v10 = vcombine.low %v5253_v31, %v2249_v58 }
  0xda   : > { %3894 = vmatmul.mubr.msk.bf16.vlgmr.msra.gmra.mrb[0].mxu0 %vm444_vm2, %v4987_v47  ;;  %v2250_v47 = vld [vmem:[%s4917_s12 + $0x4c] sm:$0x1]  ;;  %s3350_s12 = sshll.u32 %s5604_s19, 6 }
  0xdb   : > { %3902 = vmatpush3.bf16.msra.mxu0 %v3020_v8  ;;  %3897 = vmatprep.mubr.msk.bf16.mxu0 %vm444_vm2, %v5051_v45  ;;  %v4231_v45 = vld [vmem:[%s4426_s29 + $0x8] sm:$0xf]  ;;  %v2270_v53 = vunpack.c.l.bf16 %v2250_v47  ;;  %s3349_s29 = sshll.u32 %s5610_s18, 3 }
  0xdc   : > { %3764 = vmatmul.mubr.msk.bf16.vlgmr.msra.gmra.mrb[0].mxu1 %vm444_vm2, %v4879_v61  ;;  %4158 = vmatprep.subr.msk.bf16.mxu0 %vm457_vm0, %v3508_v57  ;;  %v3424_v2 = vcombine.low %v4231_v45, %v4232_v17  ;;  %v2269_v61 = vunpack.c.l.bf16 %v2249_v58  ;;  %s340_s13 = sadd.s32 %s3350_s12, %s3349_s29 }
  0xdd   : > { %3772 = vmatpush3.bf16.msra.mxu1 %v1702_v46  ;;  %3767 = vmatprep.mubr.msk.bf16.mxu1 %vm444_vm2, %v4898_v26  ;;  %v3010_v1 = vrot.slane %v2270_v53, 1  ;;  %v3096_v19 = vrot.slane %v2270_v53, 2  ;;  %s3351_s14 = sshll.u32 %s340_s13, 3 }
  0xde   : > { %4145 = vmatprep.subr.msk.bf16.mxu1 %vm457_vm0, %v4230_v39  ;;  %v3009_v26 = vrot.slane %v2269_v61, 1  ;;  %v3095_v63 = vrot.slane %v2269_v61, 2  ;;  %s5417_s27 = scalar_lea.vmem %s5447_s5, %s3351_s14 }
  0xe0   : > { %v3097_v14 = vsel %vm606_vm3, %v3095_v63, %v3096_v19 }
  0xe2   : > { %3898 = vmatmul.mubr.msk.bf16.gmra.mrb[4].mxu0 %vm444_vm2, %v3497_v10 }
  0xe3   : > { %3903 = vmatprep.mubr.msk.bf16.mxu0 %vm444_vm2, %v5105_v28  ;;  %v3011_v28 = vsel %vm405_vm1, %v3009_v26, %v3010_v1 }
  0xe4   : > { %3768 = vmatmul.mubr.msk.bf16.gmra.mrb[4].mxu1 %vm444_vm2, %v4902_v50  ;;  %v5582_v50 = vld [vmem:[#allocation6_spill] sm:$0xff]  ;;  %v3013_v31 = vpack.c.bf16 %v3011_v28, %v5290_v60 }
  0xe5   : > { %3773 = vmatprep.mubr.msk.bf16.mxu1 %vm444_vm2, %v3424_v2  ;;  %v5583_v13 = vcombine.low %v5581_v20, %v5582_v50 }
  0xea   : > { %3904 = vmatmul.mubr.msk.bf16.vlgmr.msra.gmra.mrb[0].mxu0 %vm444_vm2, %v5580_v6 }
  0xeb   : > { %3912 = vmatpush3.bf16.msra.mxu0 %v3106_v43  ;;  %3907 = vmatprep.mubr.msk.bf16.mxu0 %vm444_vm2, %v5151_v38  ;;  %v5587_v38 = vld [vmem:[#allocation13_spill] sm:$0xff] }
  0xec   : > { %3774 = vmatmul.mubr.msk.bf16.vlgmr.msra.gmra.mrb[0].mxu1 %vm444_vm2, %v5583_v13  ;;  %v5589_v16 = vcombine.low %v5587_v38, %v5588_v7 }
  0xed   : > { %3922 = vmatpush3.bf16.msra.mxu1 %v5584_v36  ;;  %3777 = vmatprep.mubr.msk.bf16.mxu1 %vm444_vm2, %v3426_v25 }
  0xf2   : > { %3908 = vmatmul.mubr.msk.bf16.gmra.mrb[4].mxu0 %vm444_vm2, %v3013_v31 }
  0xf3   : > { %3913 = vmatprep.mubr.msk.bf16.mxu0 %vm444_vm2, %v5195_v37  ;;  %v3099_v37 = vpack.c.bf16 %v3097_v14, %v2829_v34 }
  0xf4   : > { %3778 = vmatmul.mubr.msk.bf16.gmra.mrb[4].mxu1 %vm444_vm2, %v5589_v16 }
  0xf5   : > { %3787 = vmatprep.mubr.msk.bf16.mxu1 %vm444_vm2, %v1785_v4 }
  0xfa   : > { %3914 = vmatmul.mubr.msk.bf16.vlgmr.msra.gmra.mrb[0].mxu0 %vm444_vm2, %v5199_v59 }
  0xfb   : > { %3917 = vmatprep.mubr.msk.bf16.mxu0 %vm444_vm2, %v5229_v0  ;;  %v3513_v0 = vld [vmem:[%s5446_s4] ss:$0 sm:$0xff] }
 0x100   : > { %3788 = vmatmul.mubr.msk.bf16.vlgmr.msra.gmra.mrb[4].mxu1 %vm444_vm2, %v5592_v56 }
 0x102   : > { %3918 = vmatmul.mubr.msk.bf16.gmra.mrb[4].mxu0 %vm444_vm2, %v3099_v37 }
 0x1bf   : > { %v3775_v15 = vpop.f32.mrb[0].mxu1 }
 0x1c0   : > { %v1738_v22 = vpop.f32.mrb[1].mxu1 }
 0x1c1   : > { %v3776_v55 = vpop.f32.mrb[2].mxu1 }
 0x1c2   : > { %v1741_v49 = vpop.f32.mrb[3].mxu1 }
 0x1cd   : > { %v3915_v59 = vpop.f32.mrb[0].mxu0 }
 0x1ce   : > { %v3923_v27 = vadd.f32 %v3915_v59, %v3775_v15  ;;  %v3142_v33 = vpop.f32.mrb[1].mxu0 }
 0x1cf   : > { %v3924_v60 = vadd.f32 %v3142_v33, %v1738_v22  ;;  %v3916_v29 = vpop.f32.mrb[2].mxu0 }
 0x1d0   : > { %v3190_v35 = vadd.f32 %v3923_v27, %v3513_v0  ;;  %v3925_v48 = vadd.f32 %v3916_v29, %v3776_v55  ;;  %v3145_v62 = vpop.f32.mrb[3].mxu0 }
 0x1d1   : > { %v3188_v41 = vadd.f32 %v3924_v60, %v3513_v0  ;;  %v3926_v11 = vadd.f32 %v3145_v62, %v1741_v49 }
 0x1d2   : > { %3198 = vst [vmem:[%s5417_s27 + $0x10] sm:$0xff] %v3190_v35  ;;  %v3191_v44 = vadd.f32 %v3925_v48, %v3513_v0 }
 0x1d3   : > { %3196 = vst [vmem:[%s5417_s27] sm:$0xff] %v3188_v41  ;;  %v3189_v3 = vadd.f32 %v3926_v11, %v3513_v0  ;;  %v3789_v30 = vpop.f32.mrb[4].mxu1 }
 0x1d4   : > { %3199 = vst [vmem:[%s5417_s27 + $0x18] sm:$0xff] %v3191_v44  ;;  %v1854_v18 = vpop.f32.mrb[5].mxu1 }
 0x1d5   : > { %3197 = vst [vmem:[%s5417_s27 + $0x8] sm:$0xff] %v3189_v3  ;;  %v3919_v51 = vpop.f32.mrb[4].mxu0  ;;  %v3790_v42 = vpop.f32.mrb[6].mxu1 }
 0x1d6   : > { %v3927_v40 = vadd.f32 %v3919_v51, %v3789_v30  ;;  %v3158_v34 = vpop.f32.mrb[5].mxu0  ;;  %v1857_v12 = vpop.f32.mrb[7].mxu1 }
 0x1d7   : > { %v3928_v5 = vadd.f32 %v3158_v34, %v1854_v18  ;;  %v3920_v54 = vpop.f32.mrb[6].mxu0 }
 0x1d8   : > { %v3194_v8 = vadd.f32 %v3927_v40, %v3513_v0  ;;  %v3929_v57 = vadd.f32 %v3920_v54, %v3790_v42  ;;  %v3161_v46 = vpop.f32.mrb[7].mxu0 }
 0x1d9   : > { %v3192_v58 = vadd.f32 %v3928_v5, %v3513_v0  ;;  %v3930_v10 = vadd.f32 %v3161_v46, %v1857_v12 }
 0x1da   : > { %3202 = vst [vmem:[%s5417_s27 + $0x30] sm:$0xff] %v3194_v8  ;;  %v3195_v39 = vadd.f32 %v3929_v57, %v3513_v0 }
 0x1db   : > { %3200 = vst [vmem:[%s5417_s27 + $0x20] sm:$0xff] %v3192_v58  ;;  %v3193_v47 = vadd.f32 %v3930_v10, %v3513_v0 }
 0x1dc   : > { %3203 = vst [vmem:[%s5417_s27 + $0x38] sm:$0xff] %v3195_v39 }
 0x1dd   : > { %3201 = vst [vmem:[%s5417_s27 + $0x28] sm:$0xff] %v3193_v47 }
 0x1de PF: > { %s15_s22 = sadd.s32 1, %s4271_s22   ;;  %s5593_s18 = smov %s4263_s20 }
 0x1df   : > { %p12_p10 = scmp.ge.s32.totalorder %s15_s22, 18   ;;  %s5594_s19 = smov %s4267_s21 }
 0x1e0   : > { %s5595_s20 = smov %s5598_s23  ;;  %s5596_s21 = smov %s5602_s24 }
 0x1e1   :  { %14 = sbr.rel (!%p12_p10) target bundleno = 3 (0x3), region = 102 }

</bundles_post_ra>
